<compile_context>
chip_gen: v6e
topology: v6e:2x2x1
jax: 0.10.0
libtpu: 0.0.40
codegen_flags: <defaults>
</compile_context>

<pallas_src>
import math
import functools

import jax
import jax.numpy as jnp
from jax.experimental import pallas as pl
from jax.experimental.pallas import tpu as pltpu

IN_FEATURES = 512
HEAD_NUM = 8
LN_EPS = 1e-5


def _vmem_limit_bytes():
    cap = 128 * 1024 * 1024
    try:
        cap = int(getattr(pltpu.get_tpu_info(), "vmem_capacity_bytes", cap))
    except Exception:
        pass
    # 64 MiB budget on 128-MiB parts (v5e/v6e), 32 MiB on 64-MiB parts (v7x).
    return int(min(64 * 1024 * 1024, cap // 2))


VMEM_LIMIT = _vmem_limit_bytes()


def _round_up(x, m):
    return ((x + m - 1) // m) * m


def _pick_row_tile(n, target, multiple=8):
    """Full extent when small (always layout-legal); otherwise a balanced,
    `multiple`-aligned tile <= target, which guarantees >= 2 grid steps (v7x megacore)."""
    if n <= target:
        return n
    steps = pl.cdiv(n, target)
    return min(target, _round_up(pl.cdiv(n, steps), multiple))


# ----------------------------- fused linear + relu ---------------------------

def _fused_linear_relu_kernel(x_ref, *refs, n_out):
    # refs = (w_0..w_{n-1}, b_0..b_{n-1}, o_0..o_{n-1})
    w_refs = refs[:n_out]
    b_refs = refs[n_out:2 * n_out]
    o_refs = refs[2 * n_out:]
    x = x_ref[...].astype(jnp.bfloat16)                  # bf16 MXU inputs
    for w_ref, b_ref, o_ref in zip(w_refs, b_refs, o_refs):
        y = jnp.dot(x, w_ref[...], preferred_element_type=jnp.float32)  # f32 accumulate
        y = jnp.maximum(y + b_ref[...], 0.0)             # bias + F.relu in f32
        o_ref[...] = y.astype(o_ref.dtype)


def fused_linear_relu(x2d, weights, biases, out_dtype=jnp.bfloat16, row_tile=512):
    """Computes relu(x @ W_i + b_i) for each (W_i, b_i), reading x from HBM once."""
    N, D = x2d.shape
    n_out = len(weights)
    TM = _pick_row_tile(N, row_tile, multiple=16)        # bf16 output blocks need 16 rows
    grid = (pl.cdiv(N, TM),)

    in_specs = [pl.BlockSpec((TM, D), lambda i: (i, 0))]
    for w in weights:                                    # weights resident (constant idx)
        in_specs.append(pl.BlockSpec(w.shape, lambda i: (0, 0)))
    for b in biases:
        in_specs.append(pl.BlockSpec(b.shape, lambda i: (0, 0)))

    out_shapes = tuple(jax.ShapeDtypeStruct((N, w.shape[1]), out_dtype) for w in weights)
    out_specs = tuple(pl.BlockSpec((TM, w.shape[1]), lambda i: (i, 0)) for w in weights)

    kern = functools.partial(_fused_linear_relu_kernel, n_out=n_out)
    return pl.pallas_call(
        kern,
        out_shape=out_shapes,
        grid=grid,
        in_specs=in_specs,
        out_specs=out_specs,
        compiler_params=pltpu.CompilerParams(
            dimension_semantics=("parallel",),
            vmem_limit_bytes=VMEM_LIMIT),
    )(x2d, *weights, *biases)


# --------------------- attention + residual + layernorm (fused) ---------------

def _attn_residual_ln_kernel(q_ref, k_ref, v_ref, kmask_ref, qmask_ref, res_ref,
                             g_ref, beta_ref, o_ref, *, head_num, causality, q_tile):
    # q_ref:[1,TQ,D] bf16   k/v_ref:[1,Sk,D] bf16   kmask:[1,H,Sk] f32  qmask:[1,TQ,H] f32
    # res_ref:[1,TQ,D] f32 (original q input)       g/beta:[1,D] f32    o_ref:[1,TQ,D] f32
    TQ, D = q_ref.shape[1], q_ref.shape[2]
    Sk = k_ref.shape[1]
    dh = D // head_num
    pair = 2 * dh                                        # 128-lane-aligned head pair
    scale = 1.0 / math.sqrt(dh)                          # folded into q (exact in bf16)

    # Hoisted out of the unrolled head loop: mask slabs + causal offsets.
    key_off = kmask_ref[0, :, :] == 0.0                  # [H, Sk] bool
    qmask = qmask_ref[0, :, :]                           # [TQ, H] f32
    if causality:
        row = q_tile * pl.program_id(1) + jax.lax.broadcasted_iota(jnp.int32, (TQ, Sk), 0)
        col = jax.lax.broadcasted_iota(jnp.int32, (TQ, Sk), 1)
        causal_off = col > row

    head_outs = []
    for p in range(head_num // 2):
        lo = p * pair
        qp = q_ref[0, :, lo:lo + pair]                   # [TQ,128] aligned load
        kp = k_ref[0, :, lo:lo + pair]                   # [Sk,128]
        vp = v_ref[0, :, lo:lo + pair]                   # [Sk,128]
        for j in range(2):
            h = 2 * p + j
            qh = qp[:, j * dh:(j + 1) * dh] * scale
            kh = kp[:, j * dh:(j + 1) * dh]
            vh = vp[:, j * dh:(j + 1) * dh]
            # scores = q_h @ k_h^T (contract last dims; no transpose), f32 accumulate
            scores = jax.lax.dot_general(qh, kh, (((1,), (1,)), ((), ())),
                                         preferred_element_type=jnp.float32)
            scores = jnp.where(key_off[h:h + 1, :], -1.0e9, scores)
            if causality:
                scores = jnp.where(causal_off, -1.0e9, scores)
            m = jnp.max(scores, axis=-1, keepdims=True)
            e = jnp.exp(scores - m)                      # f32 softmax (v5e-safe)
            attn = e * pl.reciprocal(jnp.sum(e, axis=-1, keepdims=True), approx=True)
            attn = attn * qmask[:, h:h + 1]
            # TODO(synk): dropout(attention) is identity in eval mode.
            head_outs.append(jnp.dot(attn.astype(jnp.bfloat16), vh,
                                     preferred_element_type=jnp.float32))

    y = jnp.concatenate(head_outs, axis=-1)              # [TQ, D] f32, lane-dense
    x = y + res_ref[0, :, :]                             # residual: y + q (original input)
    mean = jnp.mean(x, axis=-1, keepdims=True)
    c = x - mean
    var = jnp.mean(c * c, axis=-1, keepdims=True)
    out = c * jax.lax.rsqrt(var + LN_EPS) * g_ref[...] + beta_ref[...]
    o_ref[0, :, :] = out.astype(o_ref.dtype)             # single lane-dense store


def attention_residual_layernorm(qh, kh, vh, kmask_bh, qmask_bh, res, gamma, beta,
                                 causality=False, q_tile=256):
    B, Sq, D = qh.shape
    Sk = kh.shape[1]
    H = kmask_bh.shape[1]
    TQ = _pick_row_tile(Sq, q_tile, multiple=16)         # bf16 q blocks need 16-row tiles
    grid = (B, pl.cdiv(Sq, TQ))
    kern = functools.partial(_attn_residual_ln_kernel, head_num=H,
                             causality=causality, q_tile=TQ)
    return pl.pallas_call(
        kern,
        out_shape=jax.ShapeDtypeStruct((B, Sq, D), jnp.float32),
        grid=grid,
        in_specs=[
            pl.BlockSpec((1, TQ, D), lambda b, qi: (b, qi, 0)),
            pl.BlockSpec((1, Sk, D), lambda b, qi: (b, 0, 0)),   # K resident across q tiles
            pl.BlockSpec((1, Sk, D), lambda b, qi: (b, 0, 0)),   # V resident across q tiles
            pl.BlockSpec((1, H, Sk), lambda b, qi: (b, 0, 0)),   # compact key mask
            pl.BlockSpec((1, TQ, H), lambda b, qi: (b, qi, 0)),  # compact query mask
            pl.BlockSpec((1, TQ, D), lambda b, qi: (b, qi, 0)),  # residual (original q)
            pl.BlockSpec((1, D), lambda b, qi: (0, 0)),          # gamma resident
            pl.BlockSpec((1, D), lambda b, qi: (0, 0)),          # beta resident
        ],
        out_specs=pl.BlockSpec((1, TQ, D), lambda b, qi: (b, qi, 0)),  # lane-dense (D=512)
        compiler_params=pltpu.CompilerParams(
            dimension_semantics=("parallel", "parallel"),
            vmem_limit_bytes=VMEM_LIMIT),
    )(qh, kh, vh, kmask_bh, qmask_bh, res, gamma, beta)


# ----------------------------- module wrappers ---------------------------------

def init_params(key, d=IN_FEATURES):
    ks = jax.random.split(key, 6)
    s = 1.0 / math.sqrt(d)
    u = lambda k, shape: jax.random.uniform(k, shape, jnp.float32, -s, s)
    return {
        # stored as W.T (kernel computes x @ w_t + b == x @ W.T + b); bf16 once at init
        "wq_t": u(ks[0], (d, d)).astype(jnp.bfloat16), "bq": u(ks[1], (1, d)),
        "wk_t": u(ks[2], (d, d)).astype(jnp.bfloat16), "bk": u(ks[3], (1, d)),
        "wv_t": u(ks[4], (d, d)).astype(jnp.bfloat16), "bv": u(ks[5], (1, d)),
        "gamma": jnp.ones((1, d), jnp.float32),
        "beta": jnp.zeros((1, d), jnp.float32),
    }


def multi_head_attention(params, q, k, v, query_mask, key_mask, causality=False,
                         fuse_qkv=False):
    B, Sq, D = q.shape
    Sk = k.shape[1]
    H = HEAD_NUM

    q2d = q.reshape(B * Sq, D)
    if fuse_qkv:
        # q is k is v: read the activations from HBM once for all three projections
        _q2, _k2, _v2 = fused_linear_relu(
            q2d,
            (params["wq_t"], params["wk_t"], params["wv_t"]),
            (params["bq"], params["bk"], params["bv"]))
    else:
        (_q2,) = fused_linear_relu(q2d, (params["wq_t"],), (params["bq"],))
        kv2d = k.reshape(B * Sk, D)
        _k2, _v2 = fused_linear_relu(
            kv2d, (params["wk_t"], params["wv_t"]), (params["bk"], params["bv"]))

    _qh = _q2.reshape(B, Sq, D)     # free reshapes; no head transpose through HBM
    _kh = _k2.reshape(B, Sk, D)
    _vh = _v2.reshape(B, Sk, D)

    # Compact per-(batch, head) masks, reproducing torch's `repeat(head_num, 1)` together
    # with the batch-major `_reshape_to_batches` ordering: attention batch index b*H + h
    # uses original-batch row (b*H + h) % B.
    kmask_bh = jnp.tile(key_mask.astype(jnp.float32), (H, 1)).reshape(B, H, Sk)
    qmask_bh = (jnp.tile(query_mask.astype(jnp.float32), (H, 1))
                .reshape(B, H, Sq).transpose(0, 2, 1))           # [B, Sq, H]

    # attention + (y + q) residual + LayerNorm in one kernel (no f32 HBM round-trip)
    return attention_residual_layernorm(
        _qh, _kh, _vh, kmask_bh, qmask_bh, q,
        params["gamma"], params["beta"], causality=causality)


def multi_atten(params, feat, dec=None, query_mask=None, key_mask=None, causality=False):
    """Forward of MultiAtten (self-attention when dec is None, else cross-attention)."""
    if dec is None:
        key_mask = (query_mask == 1).astype(query_mask.dtype)
        return multi_head_attention(params, feat, feat, feat, query_mask, key_mask,
                                    causality=causality, fuse_qkv=True)
    return multi_head_attention(params, feat, dec, dec, query_mask, key_mask,
                                causality=causality, fuse_qkv=False)


# ----------------------------- pure-JAX reference (mirrors the torch module) ----

def _reference_mha(params, q, k, v, query_mask, key_mask, causality):
    B, Sq, D = q.shape
    Sk = k.shape[1]
    H, dh = HEAD_NUM, D // HEAD_NUM
    lin = lambda x, wt, b: jax.nn.relu(x @ wt.astype(jnp.float32) + b)
    _q = lin(q, params["wq_t"], params["bq"])
    _k = lin(k, params["wk_t"], params["bk"])
    _v = lin(v, params["wv_t"], params["bv"])
    tob = lambda x, S: x.reshape(B, S, H, dh).transpose(0, 2, 1, 3).reshape(B * H, S, dh)
    qb, kb, vb = tob(_q, Sq), tob(_k, Sk), tob(_v, Sk)
    km = jnp.tile(key_mask, (H, 1))[:, None, :]                  # [B*H, 1, Sk]
    qm = jnp.tile(query_mask, (H, 1))[:, :, None]                # [B*H, Sq, 1]
    scores = jnp.einsum("bqd,bkd->bqk", qb, kb) / math.sqrt(dh)
    scores = jnp.where(km == 0, -1.0e9, scores)
    if causality:
        row = jnp.arange(Sq)[:, None]
        col = jnp.arange(Sk)[None, :]
        scores = jnp.where(col > row, -1.0e9, scores)
    attn = jax.nn.softmax(scores, axis=-1) * qm
    yb = jnp.einsum("bqk,bkd->bqd", attn, vb)
    y = yb.reshape(B, H, Sq, dh).transpose(0, 2, 1, 3).reshape(B, Sq, D) + q
    mu = y.mean(-1, keepdims=True)
    var = ((y - mu) ** 2).mean(-1, keepdims=True)
    return (y - mu) * jax.lax.rsqrt(var + LN_EPS) * params["gamma"] + params["beta"]


def _reference_multi_atten(params, feat, dec, query_mask, key_mask, causality):
    if dec is None:
        key_mask = (query_mask == 1).astype(query_mask.dtype)
        return _reference_mha(params, feat, feat, feat, query_mask, key_mask, causality)
    return _reference_mha(params, feat, dec, dec, query_mask, key_mask, causality)


# ----------------------------- demo ---------------------------------------------

if __name__ == "__main__":
    B, S, D = 2, 8, IN_FEATURES

    key = jax.random.PRNGKey(0)
    kf, kd, kp = jax.random.split(key, 3)
    feat = jax.random.normal(kf, (B, S, D), jnp.float32)

    # binary padding mask [B, S] (1 = valid, 0 = padded)
    query_mask = jnp.ones((B, S), jnp.float32).at[0, -1:].set(0.0).at[1, -2:].set(0.0)

    params = init_params(kp, D)

    def check(out, ref):
        assert out.shape == ref.shape
        assert bool(jnp.all(jnp.isfinite(out)))
        assert float(jnp.max(jnp.abs(out - ref))) < 5e-2   # bf16 MXU inputs vs f32 ref

    # self-attention path (dec=None): key_mask derived from query_mask inside multi_atten
    out_self = jax.block_until_ready(
        multi_atten(params, feat, None, query_mask=query_mask, causality=False))
    check(out_self, _reference_multi_atten(params, feat, None, query_mask, None, False))

    # causal self-attention path
    out_causal = jax.block_until_ready(
        multi_atten(params, feat, None, query_mask=query_mask, causality=True))
    check(out_causal, _reference_multi_atten(params, feat, None, query_mask, None, True))

    # cross-attention path (dec given) with a longer key sequence
    Sd = 16
    dec = jax.random.normal(kd, (B, Sd, D), jnp.float32)
    key_mask = jnp.ones((B, Sd), jnp.float32).at[1, -3:].set(0.0)
    out_cross = jax.block_until_ready(
        multi_atten(params, feat, dec, query_mask=query_mask, key_mask=key_mask,
                    causality=False))
    check(out_cross, _reference_multi_atten(params, feat, dec, query_mask, key_mask, False))

    print("KERNEL_OK")
</pallas_src>

<mosaic_0001>
module attributes {stable_mosaic.version = 11 : i64} {
  func.func @_fused_linear_relu_kernel(%arg0: i32, %arg1: memref<16x512xf32, #tpu.memory_space<vmem>>, %arg2: memref<512x512xbf16, #tpu.memory_space<vmem>>, %arg3: memref<512x512xbf16, #tpu.memory_space<vmem>>, %arg4: memref<512x512xbf16, #tpu.memory_space<vmem>>, %arg5: memref<1x512xf32, #tpu.memory_space<vmem>>, %arg6: memref<1x512xf32, #tpu.memory_space<vmem>>, %arg7: memref<1x512xf32, #tpu.memory_space<vmem>>, %arg8: memref<16x512xbf16, #tpu.memory_space<vmem>>, %arg9: memref<16x512xbf16, #tpu.memory_space<vmem>>, %arg10: memref<16x512xbf16, #tpu.memory_space<vmem>>) attributes {dimension_semantics = [#tpu.dimension_semantics<parallel>], iteration_bounds = array<i64: 1>, scalar_prefetch = 0 : i64, scratch_operands = 0 : i64, tpu.core_type = #tpu.core_type<tc>, window_params = [{transform_indices = @transform_0, window_bounds = array<i64: 16, 512>}, {pipeline_mode = #tpu.pipeline_mode<synchronous>, transform_indices = @transform_1, window_bounds = array<i64: 512, 512>}, {pipeline_mode = #tpu.pipeline_mode<synchronous>, transform_indices = @transform_2, window_bounds = array<i64: 512, 512>}, {pipeline_mode = #tpu.pipeline_mode<synchronous>, transform_indices = @transform_3, window_bounds = array<i64: 512, 512>}, {pipeline_mode = #tpu.pipeline_mode<synchronous>, transform_indices = @transform_4, window_bounds = array<i64: 1, 512>}, {pipeline_mode = #tpu.pipeline_mode<synchronous>, transform_indices = @transform_5, window_bounds = array<i64: 1, 512>}, {pipeline_mode = #tpu.pipeline_mode<synchronous>, transform_indices = @transform_6, window_bounds = array<i64: 1, 512>}, {transform_indices = @transform_7, window_bounds = array<i64: 16, 512>}, {transform_indices = @transform_8, window_bounds = array<i64: 16, 512>}, {transform_indices = @transform_9, window_bounds = array<i64: 16, 512>}]} {
    %c0 = arith.constant 0 : index
    %c0_0 = arith.constant 0 : index
    %0 = vector.load %arg1[%c0, %c0_0] : memref<16x512xf32, #tpu.memory_space<vmem>>, vector<16x512xf32>
    %1 = arith.truncf %0 : vector<16x512xf32> to vector<16x512xbf16>
    %c0_1 = arith.constant 0 : index
    %c0_2 = arith.constant 0 : index
    %2 = vector.load %arg2[%c0_1, %c0_2] : memref<512x512xbf16, #tpu.memory_space<vmem>>, vector<512x512xbf16>
    %cst = arith.constant dense<0.000000e+00> : vector<16x512xf32>
    %3 = tpu.matmul %1, %2, %cst {dimension_numbers = #tpu.dot_dimension_numbers<[1], [0], [0], [1], [0, 0, 1, 1], [], []>} : vector<16x512xbf16>, vector<512x512xbf16>, vector<16x512xf32> -> vector<16x512xf32>
    %c0_3 = arith.constant 0 : index
    %c0_4 = arith.constant 0 : index
    %4 = vector.load %arg5[%c0_3, %c0_4] : memref<1x512xf32, #tpu.memory_space<vmem>>, vector<1x512xf32>
    %5 = vector.broadcast %4 : vector<1x512xf32> to vector<16x512xf32>
    %6 = arith.addf %3, %5 : vector<16x512xf32>
    %cst_5 = arith.constant 0.000000e+00 : f32
    %7 = vector.broadcast %cst_5 : f32 to vector<16x512xf32>
    %8 = arith.maximumf %6, %7 : vector<16x512xf32>
    %9 = arith.truncf %8 : vector<16x512xf32> to vector<16x512xbf16>
    %c0_6 = arith.constant 0 : index
    %c0_7 = arith.constant 0 : index
    %10 = vector.load %arg8[%c0_6, %c0_7] : memref<16x512xbf16, #tpu.memory_space<vmem>>, vector<16x512xbf16>
    tpu.vector_store %arg8[%c0_6, %c0_7], %9 {strides = array<i32>} : memref<16x512xbf16, #tpu.memory_space<vmem>>, vector<16x512xbf16>,
    %c0_8 = arith.constant 0 : index
    %c0_9 = arith.constant 0 : index
    %11 = vector.load %arg3[%c0_8, %c0_9] : memref<512x512xbf16, #tpu.memory_space<vmem>>, vector<512x512xbf16>
    %cst_10 = arith.constant dense<0.000000e+00> : vector<16x512xf32>
    %12 = tpu.matmul %1, %11, %cst_10 {dimension_numbers = #tpu.dot_dimension_numbers<[1], [0], [0], [1], [0, 0, 1, 1], [], []>} : vector<16x512xbf16>, vector<512x512xbf16>, vector<16x512xf32> -> vector<16x512xf32>
    %c0_11 = arith.constant 0 : index
    %c0_12 = arith.constant 0 : index
    %13 = vector.load %arg6[%c0_11, %c0_12] : memref<1x512xf32, #tpu.memory_space<vmem>>, vector<1x512xf32>
    %14 = vector.broadcast %13 : vector<1x512xf32> to vector<16x512xf32>
    %15 = arith.addf %12, %14 : vector<16x512xf32>
    %cst_13 = arith.constant 0.000000e+00 : f32
    %16 = vector.broadcast %cst_13 : f32 to vector<16x512xf32>
    %17 = arith.maximumf %15, %16 : vector<16x512xf32>
    %18 = arith.truncf %17 : vector<16x512xf32> to vector<16x512xbf16>
    %c0_14 = arith.constant 0 : index
    %c0_15 = arith.constant 0 : index
    %19 = vector.load %arg9[%c0_14, %c0_15] : memref<16x512xbf16, #tpu.memory_space<vmem>>, vector<16x512xbf16>
    tpu.vector_store %arg9[%c0_14, %c0_15], %18 {strides = array<i32>} : memref<16x512xbf16, #tpu.memory_space<vmem>>, vector<16x512xbf16>,
    %c0_16 = arith.constant 0 : index
    %c0_17 = arith.constant 0 : index
    %20 = vector.load %arg4[%c0_16, %c0_17] : memref<512x512xbf16, #tpu.memory_space<vmem>>, vector<512x512xbf16>
    %cst_18 = arith.constant dense<0.000000e+00> : vector<16x512xf32>
    %21 = tpu.matmul %1, %20, %cst_18 {dimension_numbers = #tpu.dot_dimension_numbers<[1], [0], [0], [1], [0, 0, 1, 1], [], []>} : vector<16x512xbf16>, vector<512x512xbf16>, vector<16x512xf32> -> vector<16x512xf32>
    %c0_19 = arith.constant 0 : index
    %c0_20 = arith.constant 0 : index
    %22 = vector.load %arg7[%c0_19, %c0_20] : memref<1x512xf32, #tpu.memory_space<vmem>>, vector<1x512xf32>
    %23 = vector.broadcast %22 : vector<1x512xf32> to vector<16x512xf32>
    %24 = arith.addf %21, %23 : vector<16x512xf32>
    %cst_21 = arith.constant 0.000000e+00 : f32
    %25 = vector.broadcast %cst_21 : f32 to vector<16x512xf32>
    %26 = arith.maximumf %24, %25 : vector<16x512xf32>
    %27 = arith.truncf %26 : vector<16x512xf32> to vector<16x512xbf16>
    %c0_22 = arith.constant 0 : index
    %c0_23 = arith.constant 0 : index
    %28 = vector.load %arg10[%c0_22, %c0_23] : memref<16x512xbf16, #tpu.memory_space<vmem>>, vector<16x512xbf16>
    tpu.vector_store %arg10[%c0_22, %c0_23], %27 {strides = array<i32>} : memref<16x512xbf16, #tpu.memory_space<vmem>>, vector<16x512xbf16>,
    return
  }
  func.func @transform_0(%arg0: i32) -> (i32, i32) {
    %c0_i32 = arith.constant 0 : i32
    %c0_i32_0 = arith.constant 0 : i32
    return %arg0, %c0_i32 : i32, i32
  }
  func.func @transform_1(%arg0: i32) -> (i32, i32) {
    %c0_i32 = arith.constant 0 : i32
    %c0_i32_0 = arith.constant 0 : i32
    %c0_i32_1 = arith.constant 0 : i32
    return %c0_i32, %c0_i32_0 : i32, i32
  }
  func.func @transform_2(%arg0: i32) -> (i32, i32) {
    %c0_i32 = arith.constant 0 : i32
    %c0_i32_0 = arith.constant 0 : i32
    %c0_i32_1 = arith.constant 0 : i32
    return %c0_i32, %c0_i32_0 : i32, i32
  }
  func.func @transform_3(%arg0: i32) -> (i32, i32) {
    %c0_i32 = arith.constant 0 : i32
    %c0_i32_0 = arith.constant 0 : i32
    %c0_i32_1 = arith.constant 0 : i32
    return %c0_i32, %c0_i32_0 : i32, i32
  }
  func.func @transform_4(%arg0: i32) -> (i32, i32) {
    %c0_i32 = arith.constant 0 : i32
    %c0_i32_0 = arith.constant 0 : i32
    %c0_i32_1 = arith.constant 0 : i32
    return %c0_i32, %c0_i32_0 : i32, i32
  }
  func.func @transform_5(%arg0: i32) -> (i32, i32) {
    %c0_i32 = arith.constant 0 : i32
    %c0_i32_0 = arith.constant 0 : i32
    %c0_i32_1 = arith.constant 0 : i32
    return %c0_i32, %c0_i32_0 : i32, i32
  }
  func.func @transform_6(%arg0: i32) -> (i32, i32) {
    %c0_i32 = arith.constant 0 : i32
    %c0_i32_0 = arith.constant 0 : i32
    %c0_i32_1 = arith.constant 0 : i32
    return %c0_i32, %c0_i32_0 : i32, i32
  }
  func.func @transform_7(%arg0: i32) -> (i32, i32) {
    %c0_i32 = arith.constant 0 : i32
    %c0_i32_0 = arith.constant 0 : i32
    return %arg0, %c0_i32 : i32, i32
  }
  func.func @transform_8(%arg0: i32) -> (i32, i32) {
    %c0_i32 = arith.constant 0 : i32
    %c0_i32_0 = arith.constant 0 : i32
    return %arg0, %c0_i32 : i32, i32
  }
  func.func @transform_9(%arg0: i32) -> (i32, i32) {
    %c0_i32 = arith.constant 0 : i32
    %c0_i32_0 = arith.constant 0 : i32
    return %arg0, %c0_i32 : i32, i32
  }
}

</mosaic_0001>

<bundles_post_ra>
// kernel: tpu_custom_call.1
= control target key start
LH: loop header
LB: loop body
LE: loop exit
PB: predicated region body
PF: predicated region fallthrough
CT: control target
= control target key end

     0   :  { %15 = vsyncpa [#allocation3], 0  ;;  %s4493_s0 = inlined_call_operand.hbm [shape: f32[16,512], index: 0, kind: input, shape index: {}]   ;;  %s4494_s1 = inlined_call_operand.hbm [shape: bf16[512,512], index: 1, kind: input, shape index: {}]   ;;  %s4495_s2 = inlined_call_operand.hbm [shape: bf16[512,512], index: 2, kind: input, shape index: {}]   ;;  %s4496_s3 = inlined_call_operand.hbm [shape: bf16[512,512], index: 3, kind: input, shape index: {}]   ;;  %s4497_s4 = inlined_call_operand.vmem [shape: f32[1,512], index: 4, kind: input, shape index: {}]   ;;  %s4498_s5 = inlined_call_operand.vmem [shape: f32[1,512], index: 5, kind: input, shape index: {}]   ;;  %s4499_s6 = inlined_call_operand.hbm [shape: f32[1,512], index: 6, kind: input, shape index: {}]   ;;  %s4500_s7 = inlined_call_operand.hbm [shape: bf16[16,512], index: 7, kind: output, shape index: {0}]   ;;  %s4501_s8 = inlined_call_operand.hbm [shape: bf16[16,512], index: 8, kind: output, shape index: {1}]   ;;  %s4502_s9 = inlined_call_operand.hbm [shape: bf16[16,512], index: 9, kind: output, shape index: {2}]  }
   0x1   :  { %16 = vsyncpa [#allocation6], 0 }
   0x2   :  { %17 = vsyncpa [#allocation9], 0 }
   0x3   :  { %18 = vsyncpa [#allocation4], 0 }
   0x4   :  { %19 = vsyncpa [#allocation13], 0  ;;  %s4319_s30 = smov [#allocation5]  }
   0x5   :  { %s37_s10 = sshll.u32 %s4319_s30, 4  ;;  %s38_s10 = int_to_ptr.vmem [resolvable:$true] %s37_s10 }
   0x6   :  { %s4157_s11 = scalar_lea.vmem %s38_s10, 16384  ;;  %p4162_p1 = scmp.lt.s32.totalorder %s38_s10, %s38_s10 }
   0x7   :  { %p4158_p0 = scmp.ne.s32.totalorder %s38_s10, %s4157_s11  ;;  %p4163_p2 = scmp.lt.s32.totalorder %s4157_s11, %s4157_s11 }
   0x9   :  { %p4164_p3 = por %p4163_p2, %p4162_p1 }
   0xb   :  { %p4165_p4 = pnand %p4164_p3, %p4158_p0 }
   0xd   :  { %4168 = shalt.err (!%p4165_p4)
}
   0xe   :  { %s4320_s12 = smov 256   ;;  %s4321_s13 = smov 16  }
   0xf   :  { %43 = dma.hbm_to_vmem [thread:$0]  %s4494_s1, 16384, %s38_s10, [#allocation6], %s4320_s12, %s4320_s12, %s4321_s13  }
  0x10   :  { %s4322_s16 = smov [#allocation8]   ;;  %s4323_s18 = smov [#allocation2]  }
  0x11   :  { %s61_s17 = sshll.u32 %s4322_s16, 4  ;;  %s25_s19 = sshll.u32 %s4323_s18, 4  ;;  %s62_s17 = int_to_ptr.vmem [resolvable:$true] %s61_s17  ;;  %s26_s19 = int_to_ptr.vmem [resolvable:$true] %s25_s19 }
  0x12   :  { %s4177_s20 = scalar_lea.vmem %s62_s17, 16384  ;;  %p4182_p6 = scmp.lt.s32.totalorder %s62_s17, %s62_s17 }
  0x13   :  { %p4178_p5 = scmp.ne.s32.totalorder %s62_s17, %s4177_s20  ;;  %p4183_p7 = scmp.lt.s32.totalorder %s4177_s20, %s4177_s20 }
  0x15   :  { %p4184_p8 = por %p4183_p7, %p4182_p6 }
  0x17   :  { %p4185_p9 = pnand %p4184_p8, %p4178_p5 }
  0x19   :  { %4188 = shalt.err (!%p4185_p9)
}
  0x1a   :  { %67 = dma.hbm_to_vmem [thread:$0]  %s4496_s3, 16384, %s62_s17, [#allocation9], %s4320_s12, %s4320_s12, %s4321_s13  }
  0x1b   :  { %s4197_s1 = scalar_lea.vmem %s26_s19, 1024  ;;  %p4202_p11 = scmp.lt.s32.totalorder %s26_s19, %s26_s19 }
  0x1c   :  { %p4198_p10 = scmp.ne.s32.totalorder %s26_s19, %s4197_s1  ;;  %p4203_p12 = scmp.lt.s32.totalorder %s4197_s1, %s4197_s1 }
  0x1e   :  { %p4204_p13 = por %p4203_p12, %p4202_p11 }
  0x20   :  { %p4205_p0 = pnand %p4204_p13, %p4198_p10 }
  0x22   :  { %4208 = shalt.err (!%p4205_p0)
}
  0x23   :  { %s4324_s23 = smov 512   ;;  %s4325_s24 = smov 32  }
  0x24   :  { %31 = dma.hbm_to_vmem [thread:$0]  %s4493_s0, 1024, %s26_s19, [#allocation3], %s4324_s23, %s4324_s23, %s4325_s24  }
  0x25   :  { %s4326_s27 = smov [#allocation7]   ;;  %s4327_s29 = smov [#allocation10]  }
  0x26   :  { %s49_s28 = sshll.u32 %s4326_s27, 4  ;;  %s78_s30 = sshll.u32 %s4327_s29, 4  ;;  %s50_s28 = int_to_ptr.vmem [resolvable:$true] %s49_s28  ;;  %s79_s30 = int_to_ptr.vmem [resolvable:$true] %s78_s30 }
  0x27   :  { %s4217_s3 = scalar_lea.vmem %s50_s28, 16384  ;;  %p4222_p2 = scmp.lt.s32.totalorder %s50_s28, %s50_s28 }
  0x28   :  { %p4218_p1 = scmp.ne.s32.totalorder %s50_s28, %s4217_s3  ;;  %p4223_p3 = scmp.lt.s32.totalorder %s4217_s3, %s4217_s3 }
  0x2a   :  { %p4224_p4 = por %p4223_p3, %p4222_p2 }
  0x2c   :  { %p4225_p5 = pnand %p4224_p4, %p4218_p1 }
  0x2e   :  { %4228 = shalt.err (!%p4225_p5)
}
  0x2f   :  { %55 = dma.hbm_to_vmem [thread:$0]  %s4495_s2, 16384, %s50_s28, [#allocation6], %s4320_s12, %s4320_s12, %s4321_s13  }
  0x30   :  { %s4237_s0 = scalar_lea.vmem %s79_s30, 64  ;;  %p4242_p7 = scmp.lt.s32.totalorder %s79_s30, %s79_s30 }
  0x31   :  { %p4238_p6 = scmp.ne.s32.totalorder %s79_s30, %s4237_s0  ;;  %p4243_p8 = scmp.lt.s32.totalorder %s4237_s0, %s4237_s0 }
  0x33   :  { %p4244_p9 = por %p4243_p8, %p4242_p7 }
  0x35   :  { %p4245_p10 = pnand %p4244_p9, %p4238_p6 }
  0x37   :  { %4248 = shalt.err (!%p4245_p10)
}
  0x38   :  { %81 = dma.hbm_to_vmem [thread:$0]  %s4499_s6, 64, %s79_s30, [#allocation9]  }
  0x39   :  { %4309 = dma.done.wait [#allocation3], 1024  }
  0x3a   :  { %4310 = vsyncadd [#allocation3], 4294966272 }
  0x3b   :  { %4311 = dma.done.wait [#allocation6], 32768  }
  0x3c   :  { %4312 = vsyncadd [#allocation6], 4294934528 }
  0x3d   :  { %4313 = dma.done.wait [#allocation9], 16448  }
  0x3e   :  { %4314 = vsyncadd [#allocation9], 4294950848  ;;  %v3573_v0 = vld [vmem:[#allocation5 + $0xe4] ss:$16 sps:$4 sm:$0xff]   ;;  %v3577_v2 = vld [vmem:[#allocation5 + $0xe0] ss:$16 sps:$4 sm:$0xff]  }
  0x3f   :  { %v3575_v1 = vld [vmem:[#allocation5 + $0x2e4] ss:$16 sps:$4 sm:$0xff]   ;;  %899 = vmatprep.subr.bf16.mxu0 %v3573_v0  ;;  %v3578_v3 = vld [vmem:[#allocation5 + $0x2e0] ss:$16 sps:$4 sm:$0xff]   ;;  %v98_v46 = vld [vmem:[#allocation2 + $0x8] sm:$0xff]  ;;  %s4329_s18 = smov [#allocation11]  }
  0x40   :  { %942 = vmatprep.subr.bf16.mxu1 %v3575_v1  ;;  %v3579_v4 = vld [vmem:[#allocation5 + $0xc4] ss:$16 sps:$4 sm:$0xff]   ;;  %900 = vmatpush1.bf16.msra.mxu0 %v3577_v2  ;;  %v3583_v6 = vld [vmem:[#allocation5 + $0xc0] ss:$16 sps:$4 sm:$0xff]   ;;  %v102_v47 = vld [vmem:[#allocation2 + $0x28] sm:$0xff]  ;;  %s3108_s19 = sshll.u32 %s4329_s18, 4  ;;  %s3109_s19 = int_to_ptr.vmem [resolvable:$true] %s3108_s19 }
  0x41   :  { %943 = vmatpush1.bf16.msra.mxu1 %v3578_v3  ;;  %v3581_v5 = vld [vmem:[#allocation5 + $0x2c4] ss:$16 sps:$4 sm:$0xff]   ;;  %901 = vmatprep.subr.bf16.mxu0 %v3579_v4  ;;  %v3584_v7 = vld [vmem:[#allocation5 + $0x2c0] ss:$16 sps:$4 sm:$0xff]   ;;  %v100_v48 = vld [vmem:[#allocation2 + $0x18] sm:$0xff]  ;;  %v4405_v53 = vpack.c.bf16 %v102_v47, %v98_v46 }
  0x42   :  { %944 = vmatprep.subr.bf16.mxu1 %v3581_v5  ;;  %v3585_v8 = vld [vmem:[#allocation5 + $0xa4] ss:$16 sps:$4 sm:$0xff]   ;;  %v3589_v10 = vld [vmem:[#allocation5 + $0xa0] ss:$16 sps:$4 sm:$0xff]   ;;  %v104_v49 = vld [vmem:[#allocation2 + $0x38] sm:$0xff] }
  0x43   :  { %v3587_v9 = vld [vmem:[#allocation5 + $0x2a4] ss:$16 sps:$4 sm:$0xff]   ;;  %v3590_v11 = vld [vmem:[#allocation5 + $0x2a0] ss:$16 sps:$4 sm:$0xff]   ;;  %v4407_v54 = vpack.c.bf16 %v104_v49, %v100_v48  ;;  %931 = vmatprep.mubr.bf16.mxu0 %v4405_v53  ;;  %v3717_v46 = vld [vmem:[#allocation5 + $0x1e8] ss:$16 sps:$4 sm:$0xff]  }
  0x44   :  { %902 = vmatpush1.bf16.msra.mxu0 %v3583_v6  ;;  %v3591_v12 = vld [vmem:[#allocation5 + $0x84] ss:$16 sps:$4 sm:$0xff]   ;;  %v3595_v14 = vld [vmem:[#allocation5 + $0x80] ss:$16 sps:$4 sm:$0xff]   ;;  %v3720_v47 = vld [vmem:[#allocation5 + $0x3e8] ss:$16 sps:$4 sm:$0xff]  }
  0x45   :  { %945 = vmatpush1.bf16.msra.mxu1 %v3584_v7  ;;  %903 = vmatprep.subr.bf16.mxu0 %v3585_v8  ;;  %v3593_v13 = vld [vmem:[#allocation5 + $0x284] ss:$16 sps:$4 sm:$0xff]   ;;  %v3596_v15 = vld [vmem:[#allocation5 + $0x280] ss:$16 sps:$4 sm:$0xff]   ;;  %v3725_v48 = vld [vmem:[#allocation5 + $0x1cc] ss:$16 sps:$4 sm:$0xff]  }
  0x46   :  { %946 = vmatprep.subr.bf16.mxu1 %v3587_v9  ;;  %v3597_v16 = vld [vmem:[#allocation5 + $0x64] ss:$16 sps:$4 sm:$0xff]   ;;  %v3601_v18 = vld [vmem:[#allocation5 + $0x60] ss:$16 sps:$4 sm:$0xff]   ;;  %974 = vmatprep.mubr.bf16.mxu1 %v4407_v54  ;;  %v3728_v49 = vld [vmem:[#allocation5 + $0x3cc] ss:$16 sps:$4 sm:$0xff]  }
  0x47   :  { %v3599_v17 = vld [vmem:[#allocation5 + $0x264] ss:$16 sps:$4 sm:$0xff]   ;;  %v3602_v19 = vld [vmem:[#allocation5 + $0x260] ss:$16 sps:$4 sm:$0xff]  }
  0x48   :  { %904 = vmatpush1.bf16.msra.mxu0 %v3589_v10  ;;  %v3603_v20 = vld [vmem:[#allocation5 + $0x44] ss:$16 sps:$4 sm:$0xff]   ;;  %v3607_v22 = vld [vmem:[#allocation5 + $0x40] ss:$16 sps:$4 sm:$0xff]   ;;  %v3671_v10 = vld [vmem:[#allocation5 + $0xec] ss:$16 sps:$4 sm:$0xff]  }
  0x49   :  { %947 = vmatpush1.bf16.msra.mxu1 %v3590_v11  ;;  %905 = vmatprep.subr.bf16.mxu0 %v3591_v12  ;;  %v3605_v21 = vld [vmem:[#allocation5 + $0x244] ss:$16 sps:$4 sm:$0xff]   ;;  %v3608_v23 = vld [vmem:[#allocation5 + $0x240] ss:$16 sps:$4 sm:$0xff]   ;;  %v3674_v11 = vld [vmem:[#allocation5 + $0x2ec] ss:$16 sps:$4 sm:$0xff]  }
  0x4a   :  { %948 = vmatprep.subr.bf16.mxu1 %v3593_v13  ;;  %v3609_v24 = vld [vmem:[#allocation5 + $0x24] ss:$16 sps:$4 sm:$0xff]   ;;  %v3613_v26 = vld [vmem:[#allocation5 + $0x20] ss:$16 sps:$4 sm:$0xff]  }
  0x4b   :  { %v3611_v25 = vld [vmem:[#allocation5 + $0x224] ss:$16 sps:$4 sm:$0xff]   ;;  %v3614_v27 = vld [vmem:[#allocation5 + $0x220] ss:$16 sps:$4 sm:$0xff]  }
  0x4c   :  { %906 = vmatpush1.bf16.msra.mxu0 %v3595_v14  ;;  %v3615_v28 = vld [vmem:[#allocation5 + $0x4] ss:$16 sps:$4 sm:$0xff]   ;;  %v3619_v30 = vld [vmem:[#allocation5] ss:$16 sps:$4 sm:$0xff]   ;;  %v3669_v14 = vld [vmem:[#allocation5 + $0xe8] ss:$16 sps:$4 sm:$0xff]  }
  0x4d   :  { %949 = vmatpush1.bf16.msra.mxu1 %v3596_v15  ;;  %907 = vmatprep.subr.bf16.mxu0 %v3597_v16  ;;  %v3617_v29 = vld [vmem:[#allocation5 + $0x204] ss:$16 sps:$4 sm:$0xff]   ;;  %v3620_v31 = vld [vmem:[#allocation5 + $0x200] ss:$16 sps:$4 sm:$0xff]   ;;  %v3672_v15 = vld [vmem:[#allocation5 + $0x2e8] ss:$16 sps:$4 sm:$0xff]  }
  0x4e   :  { %950 = vmatprep.subr.bf16.mxu1 %v3599_v17  ;;  %v3621_v32 = vld [vmem:[#allocation5 + $0x1e4] ss:$16 sps:$4 sm:$0xff]   ;;  %v3625_v34 = vld [vmem:[#allocation5 + $0x1e0] ss:$16 sps:$4 sm:$0xff]   ;;  %v3677_v16 = vld [vmem:[#allocation5 + $0xcc] ss:$16 sps:$4 sm:$0xff]  }
  0x4f   :  { %v3623_v33 = vld [vmem:[#allocation5 + $0x3e4] ss:$16 sps:$4 sm:$0xff]   ;;  %v3626_v35 = vld [vmem:[#allocation5 + $0x3e0] ss:$16 sps:$4 sm:$0xff]   ;;  %v3680_v17 = vld [vmem:[#allocation5 + $0x2cc] ss:$16 sps:$4 sm:$0xff]  }
  0x50   :  { %908 = vmatpush1.bf16.msra.mxu0 %v3601_v18  ;;  %v3627_v36 = vld [vmem:[#allocation5 + $0x1c4] ss:$16 sps:$4 sm:$0xff]   ;;  %v3631_v38 = vld [vmem:[#allocation5 + $0x1c0] ss:$16 sps:$4 sm:$0xff]   ;;  %v3675_v18 = vld [vmem:[#allocation5 + $0xc8] ss:$16 sps:$4 sm:$0xff]  }
  0x51   :  { %951 = vmatpush1.bf16.msra.mxu1 %v3602_v19  ;;  %909 = vmatprep.subr.bf16.mxu0 %v3603_v20  ;;  %v3629_v37 = vld [vmem:[#allocation5 + $0x3c4] ss:$16 sps:$4 sm:$0xff]   ;;  %v3632_v39 = vld [vmem:[#allocation5 + $0x3c0] ss:$16 sps:$4 sm:$0xff]   ;;  %v3678_v19 = vld [vmem:[#allocation5 + $0x2c8] ss:$16 sps:$4 sm:$0xff]  }
  0x52   :  { %952 = vmatprep.subr.bf16.mxu1 %v3605_v21  ;;  %v3633_v40 = vld [vmem:[#allocation5 + $0x1a4] ss:$16 sps:$4 sm:$0xff]   ;;  %v3637_v42 = vld [vmem:[#allocation5 + $0x1a0] ss:$16 sps:$4 sm:$0xff]   ;;  %v3683_v20 = vld [vmem:[#allocation5 + $0xac] ss:$16 sps:$4 sm:$0xff]  }
  0x53   :  { %v3635_v41 = vld [vmem:[#allocation5 + $0x3a4] ss:$16 sps:$4 sm:$0xff]   ;;  %v3638_v43 = vld [vmem:[#allocation5 + $0x3a0] ss:$16 sps:$4 sm:$0xff]   ;;  %v3686_v21 = vld [vmem:[#allocation5 + $0x2ac] ss:$16 sps:$4 sm:$0xff]  }
  0x54   :  { %910 = vmatpush1.bf16.msra.mxu0 %v3607_v22  ;;  %v3639_v44 = vld [vmem:[#allocation5 + $0x184] ss:$16 sps:$4 sm:$0xff]   ;;  %v3643_v50 = vld [vmem:[#allocation5 + $0x180] ss:$16 sps:$4 sm:$0xff]   ;;  %v3681_v22 = vld [vmem:[#allocation5 + $0xa8] ss:$16 sps:$4 sm:$0xff]  }
  0x55   :  { %953 = vmatpush1.bf16.msra.mxu1 %v3608_v23  ;;  %911 = vmatprep.subr.bf16.mxu0 %v3609_v24  ;;  %v3641_v45 = vld [vmem:[#allocation5 + $0x384] ss:$16 sps:$4 sm:$0xff]   ;;  %v3644_v51 = vld [vmem:[#allocation5 + $0x380] ss:$16 sps:$4 sm:$0xff]   ;;  %v3684_v23 = vld [vmem:[#allocation5 + $0x2a8] ss:$16 sps:$4 sm:$0xff]  }
  0x56   :  { %954 = vmatprep.subr.bf16.mxu1 %v3611_v25  ;;  %v3645_v52 = vld [vmem:[#allocation5 + $0x164] ss:$16 sps:$4 sm:$0xff]   ;;  %v3649_v56 = vld [vmem:[#allocation5 + $0x160] ss:$16 sps:$4 sm:$0xff]   ;;  %v3689_v24 = vld [vmem:[#allocation5 + $0x8c] ss:$16 sps:$4 sm:$0xff]  }
  0x57   :  { %v3647_v55 = vld [vmem:[#allocation5 + $0x364] ss:$16 sps:$4 sm:$0xff]   ;;  %v3650_v57 = vld [vmem:[#allocation5 + $0x360] ss:$16 sps:$4 sm:$0xff]   ;;  %v3692_v25 = vld [vmem:[#allocation5 + $0x28c] ss:$16 sps:$4 sm:$0xff]  }
  0x58   :  { %912 = vmatpush1.bf16.msra.mxu0 %v3613_v26  ;;  %v3651_v58 = vld [vmem:[#allocation5 + $0x144] ss:$16 sps:$4 sm:$0xff]   ;;  %v3655_v60 = vld [vmem:[#allocation5 + $0x140] ss:$16 sps:$4 sm:$0xff]   ;;  %v3687_v26 = vld [vmem:[#allocation5 + $0x88] ss:$16 sps:$4 sm:$0xff]  }
  0x59   :  { %955 = vmatpush1.bf16.msra.mxu1 %v3614_v27  ;;  %913 = vmatprep.subr.bf16.mxu0 %v3615_v28  ;;  %v3653_v59 = vld [vmem:[#allocation5 + $0x344] ss:$16 sps:$4 sm:$0xff]   ;;  %v3656_v61 = vld [vmem:[#allocation5 + $0x340] ss:$16 sps:$4 sm:$0xff]   ;;  %v3690_v27 = vld [vmem:[#allocation5 + $0x288] ss:$16 sps:$4 sm:$0xff]  }
  0x5a   :  { %956 = vmatprep.subr.bf16.mxu1 %v3617_v29  ;;  %v3657_v62 = vld [vmem:[#allocation5 + $0x124] ss:$16 sps:$4 sm:$0xff]   ;;  %v3661_v0 = vld [vmem:[#allocation5 + $0x120] ss:$16 sps:$4 sm:$0xff]   ;;  %v3695_v28 = vld [vmem:[#allocation5 + $0x6c] ss:$16 sps:$4 sm:$0xff]  }
  0x5b   :  { %v3659_v63 = vld [vmem:[#allocation5 + $0x324] ss:$16 sps:$4 sm:$0xff]   ;;  %v3662_v1 = vld [vmem:[#allocation5 + $0x320] ss:$16 sps:$4 sm:$0xff]   ;;  %v3698_v29 = vld [vmem:[#allocation5 + $0x26c] ss:$16 sps:$4 sm:$0xff]  }
  0x5c   :  { %914 = vmatpush1.bf16.msra.mxu0 %v3619_v30  ;;  %v3663_v2 = vld [vmem:[#allocation5 + $0x104] ss:$16 sps:$4 sm:$0xff]   ;;  %v3667_v4 = vld [vmem:[#allocation5 + $0x100] ss:$16 sps:$4 sm:$0xff]   ;;  %v3693_v30 = vld [vmem:[#allocation5 + $0x68] ss:$16 sps:$4 sm:$0xff]  }
  0x5d   :  { %957 = vmatpush1.bf16.msra.mxu1 %v3620_v31  ;;  %915 = vmatprep.subr.bf16.mxu0 %v3621_v32  ;;  %v3665_v3 = vld [vmem:[#allocation5 + $0x304] ss:$16 sps:$4 sm:$0xff]   ;;  %v3668_v5 = vld [vmem:[#allocation5 + $0x300] ss:$16 sps:$4 sm:$0xff]   ;;  %v3696_v31 = vld [vmem:[#allocation5 + $0x268] ss:$16 sps:$4 sm:$0xff]  }
  0x5e   :  { %958 = vmatprep.subr.bf16.mxu1 %v3623_v33  ;;  %v97_v6 = vld [vmem:[#allocation2] sm:$0xff]  ;;  %v99_v8 = vld [vmem:[#allocation2 + $0x10] sm:$0xff]  ;;  %v3701_v32 = vld [vmem:[#allocation5 + $0x4c] ss:$16 sps:$4 sm:$0xff]  }
  0x5f   :  { %v101_v7 = vld [vmem:[#allocation2 + $0x20] sm:$0xff]  ;;  %v103_v9 = vld [vmem:[#allocation2 + $0x30] sm:$0xff]  ;;  %v3704_v33 = vld [vmem:[#allocation5 + $0x24c] ss:$16 sps:$4 sm:$0xff]  }
  0x60   :  { %916 = vmatpush2.bf16.msra.mxu0 %v3625_v34  ;;  %v4411_v12 = vpack.c.bf16 %v101_v7, %v97_v6  ;;  %v4413_v13 = vpack.c.bf16 %v103_v9, %v99_v8  ;;  %v3699_v34 = vld [vmem:[#allocation5 + $0x48] ss:$16 sps:$4 sm:$0xff]   ;;  %v3755_v6 = vld [vmem:[#allocation5 + $0x12c] ss:$16 sps:$4 sm:$0xff]  }
  0x61   :  { %959 = vmatpush2.bf16.msra.mxu1 %v3626_v35  ;;  %917 = vmatprep.subr.bf16.mxu0 %v3627_v36  ;;  %v3702_v35 = vld [vmem:[#allocation5 + $0x248] ss:$16 sps:$4 sm:$0xff]   ;;  %v3707_v36 = vld [vmem:[#allocation5 + $0x2c] ss:$16 sps:$4 sm:$0xff]  }
  0x62   :  { %960 = vmatprep.subr.bf16.mxu1 %v3629_v37  ;;  %v3710_v37 = vld [vmem:[#allocation5 + $0x22c] ss:$16 sps:$4 sm:$0xff]   ;;  %v3753_v8 = vld [vmem:[#allocation5 + $0x128] ss:$16 sps:$4 sm:$0xff]  }
  0x63   :  { %v3758_v7 = vld [vmem:[#allocation5 + $0x32c] ss:$16 sps:$4 sm:$0xff]   ;;  %v3756_v9 = vld [vmem:[#allocation5 + $0x328] ss:$16 sps:$4 sm:$0xff]  }
  0x64   :  { %918 = vmatpush2.bf16.msra.mxu0 %v3631_v38  ;;  %v3705_v38 = vld [vmem:[#allocation5 + $0x28] ss:$16 sps:$4 sm:$0xff]  }
  0x65   :  { %961 = vmatpush2.bf16.msra.mxu1 %v3632_v39  ;;  %919 = vmatprep.subr.bf16.mxu0 %v3633_v40  ;;  %v3708_v39 = vld [vmem:[#allocation5 + $0x228] ss:$16 sps:$4 sm:$0xff]   ;;  %v3713_v40 = vld [vmem:[#allocation5 + $0xc] ss:$16 sps:$4 sm:$0xff]  }
  0x66   :  { %962 = vmatprep.subr.bf16.mxu1 %v3635_v41  ;;  %v3716_v41 = vld [vmem:[#allocation5 + $0x20c] ss:$16 sps:$4 sm:$0xff]  }
  0x68   :  { %920 = vmatpush2.bf16.msra.mxu0 %v3637_v42  ;;  %v3711_v42 = vld [vmem:[#allocation5 + $0x8] ss:$16 sps:$4 sm:$0xff]  }
  0x69   :  { %963 = vmatpush2.bf16.msra.mxu1 %v3638_v43  ;;  %921 = vmatprep.subr.bf16.mxu0 %v3639_v44  ;;  %v3714_v43 = vld [vmem:[#allocation5 + $0x208] ss:$16 sps:$4 sm:$0xff]   ;;  %v3719_v44 = vld [vmem:[#allocation5 + $0x1ec] ss:$16 sps:$4 sm:$0xff]  }
  0x6a   :  { %964 = vmatprep.subr.bf16.mxu1 %v3641_v45  ;;  %v3722_v45 = vld [vmem:[#allocation5 + $0x3ec] ss:$16 sps:$4 sm:$0xff]  }
  0x6c   :  { %922 = vmatpush2.bf16.msra.mxu0 %v3643_v50  ;;  %v3723_v50 = vld [vmem:[#allocation5 + $0x1c8] ss:$16 sps:$4 sm:$0xff]  }
  0x6d   :  { %965 = vmatpush2.bf16.msra.mxu1 %v3644_v51  ;;  %923 = vmatprep.subr.bf16.mxu0 %v3645_v52  ;;  %v3726_v51 = vld [vmem:[#allocation5 + $0x3c8] ss:$16 sps:$4 sm:$0xff]   ;;  %v3731_v52 = vld [vmem:[#allocation5 + $0x1ac] ss:$16 sps:$4 sm:$0xff]  }
  0x6e   :  { %966 = vmatprep.subr.bf16.mxu1 %v3647_v55  ;;  %v3734_v55 = vld [vmem:[#allocation5 + $0x3ac] ss:$16 sps:$4 sm:$0xff]  }
  0x70   :  { %924 = vmatpush2.bf16.msra.mxu0 %v3649_v56  ;;  %v3729_v56 = vld [vmem:[#allocation5 + $0x1a8] ss:$16 sps:$4 sm:$0xff]  }
  0x71   :  { %967 = vmatpush2.bf16.msra.mxu1 %v3650_v57  ;;  %925 = vmatprep.subr.bf16.mxu0 %v3651_v58  ;;  %v3732_v57 = vld [vmem:[#allocation5 + $0x3a8] ss:$16 sps:$4 sm:$0xff]   ;;  %v3737_v58 = vld [vmem:[#allocation5 + $0x18c] ss:$16 sps:$4 sm:$0xff]  }
  0x72   :  { %968 = vmatprep.subr.bf16.mxu1 %v3653_v59  ;;  %v3740_v59 = vld [vmem:[#allocation5 + $0x38c] ss:$16 sps:$4 sm:$0xff]  }
  0x74   :  { %926 = vmatpush2.bf16.msra.mxu0 %v3655_v60  ;;  %v3735_v60 = vld [vmem:[#allocation5 + $0x188] ss:$16 sps:$4 sm:$0xff]  }
  0x75   :  { %969 = vmatpush2.bf16.msra.mxu1 %v3656_v61  ;;  %927 = vmatprep.subr.bf16.mxu0 %v3657_v62  ;;  %v3738_v61 = vld [vmem:[#allocation5 + $0x388] ss:$16 sps:$4 sm:$0xff]   ;;  %v3743_v62 = vld [vmem:[#allocation5 + $0x16c] ss:$16 sps:$4 sm:$0xff]  }
  0x76   :  { %970 = vmatprep.subr.bf16.mxu1 %v3659_v63  ;;  %v3746_v63 = vld [vmem:[#allocation5 + $0x36c] ss:$16 sps:$4 sm:$0xff]  }
  0x78   :  { %928 = vmatpush2.bf16.msra.mxu0 %v3661_v0  ;;  %v3741_v0 = vld [vmem:[#allocation5 + $0x168] ss:$16 sps:$4 sm:$0xff]  }
  0x79   :  { %971 = vmatpush2.bf16.msra.mxu1 %v3662_v1  ;;  %929 = vmatprep.subr.bf16.mxu0 %v3663_v2  ;;  %v3744_v1 = vld [vmem:[#allocation5 + $0x368] ss:$16 sps:$4 sm:$0xff]   ;;  %v3749_v2 = vld [vmem:[#allocation5 + $0x14c] ss:$16 sps:$4 sm:$0xff]  }
  0x7a   :  { %972 = vmatprep.subr.bf16.mxu1 %v3665_v3  ;;  %v3752_v3 = vld [vmem:[#allocation5 + $0x34c] ss:$16 sps:$4 sm:$0xff]  }
  0x7c   :  { %930 = vmatpush2.bf16.msra.mxu0 %v3667_v4  ;;  %v3747_v4 = vld [vmem:[#allocation5 + $0x148] ss:$16 sps:$4 sm:$0xff]  }
  0x7d   :  { %973 = vmatpush2.bf16.msra.mxu1 %v3668_v5  ;;  %985 = vmatprep.subr.bf16.mxu0 %v3671_v10  ;;  %v3750_v5 = vld [vmem:[#allocation5 + $0x348] ss:$16 sps:$4 sm:$0xff]   ;;  %v3761_v10 = vld [vmem:[#allocation5 + $0x10c] ss:$16 sps:$4 sm:$0xff]  }
  0x7e   :  { %1028 = vmatprep.subr.bf16.mxu1 %v3674_v11  ;;  %v3764_v11 = vld [vmem:[#allocation5 + $0x30c] ss:$16 sps:$4 sm:$0xff]  }
  0x7f   :  { %932 = vmatmul.mubr.bf16.vlgmr.msra.gmra.mxu0 %v4411_v12 }
  0x80   :  { %975 = vmatmul.mubr.bf16.vlgmr.msra.gmra.mxu1 %v4413_v13  ;;  %986 = vmatpush1.bf16.msra.mxu0 %v3669_v14  ;;  %v3759_v14 = vld [vmem:[#allocation5 + $0x108] ss:$16 sps:$4 sm:$0xff]  }
  0x81   :  { %1029 = vmatpush1.bf16.msra.mxu1 %v3672_v15  ;;  %987 = vmatprep.subr.bf16.mxu0 %v3677_v16  ;;  %v3762_v15 = vld [vmem:[#allocation5 + $0x308] ss:$16 sps:$4 sm:$0xff]   ;;  %v3767_v16 = vld [vmem:[#allocation7 + $0xe4] ss:$16 sps:$4 sm:$0xff]  }
  0x82   :  { %1030 = vmatprep.subr.bf16.mxu1 %v3680_v17  ;;  %1017 = vmatprep.mubr.bf16.mxu0 %v4405_v53  ;;  %v3770_v17 = vld [vmem:[#allocation7 + $0x2e4] ss:$16 sps:$4 sm:$0xff]  }
  0x83   :  { %1060 = vmatprep.mubr.bf16.mxu1 %v4407_v54 }
  0x84   :  { %988 = vmatpush1.bf16.msra.mxu0 %v3675_v18  ;;  %v3765_v18 = vld [vmem:[#allocation7 + $0xe0] ss:$16 sps:$4 sm:$0xff]  }
  0x85   :  { %1031 = vmatpush1.bf16.msra.mxu1 %v3678_v19  ;;  %989 = vmatprep.subr.bf16.mxu0 %v3683_v20  ;;  %v3768_v19 = vld [vmem:[#allocation7 + $0x2e0] ss:$16 sps:$4 sm:$0xff]   ;;  %v3773_v20 = vld [vmem:[#allocation7 + $0xc4] ss:$16 sps:$4 sm:$0xff]  }
  0x86   :  { %1032 = vmatprep.subr.bf16.mxu1 %v3686_v21  ;;  %v3776_v21 = vld [vmem:[#allocation7 + $0x2c4] ss:$16 sps:$4 sm:$0xff]  }
  0x88   :  { %990 = vmatpush1.bf16.msra.mxu0 %v3681_v22  ;;  %v3771_v22 = vld [vmem:[#allocation7 + $0xc0] ss:$16 sps:$4 sm:$0xff]  }
  0x89   :  { %1033 = vmatpush1.bf16.msra.mxu1 %v3684_v23  ;;  %991 = vmatprep.subr.bf16.mxu0 %v3689_v24  ;;  %v3774_v23 = vld [vmem:[#allocation7 + $0x2c0] ss:$16 sps:$4 sm:$0xff]   ;;  %v3779_v24 = vld [vmem:[#allocation7 + $0xa4] ss:$16 sps:$4 sm:$0xff]  }
  0x8a   :  { %1034 = vmatprep.subr.bf16.mxu1 %v3692_v25  ;;  %v3782_v25 = vld [vmem:[#allocation7 + $0x2a4] ss:$16 sps:$4 sm:$0xff]  }
  0x8c   :  { %992 = vmatpush1.bf16.msra.mxu0 %v3687_v26  ;;  %v3777_v26 = vld [vmem:[#allocation7 + $0xa0] ss:$16 sps:$4 sm:$0xff]  }
  0x8d   :  { %1035 = vmatpush1.bf16.msra.mxu1 %v3690_v27  ;;  %993 = vmatprep.subr.bf16.mxu0 %v3695_v28  ;;  %v3780_v27 = vld [vmem:[#allocation7 + $0x2a0] ss:$16 sps:$4 sm:$0xff]   ;;  %v3785_v28 = vld [vmem:[#allocation7 + $0x84] ss:$16 sps:$4 sm:$0xff]  }
  0x8e   :  { %1036 = vmatprep.subr.bf16.mxu1 %v3698_v29  ;;  %v3788_v29 = vld [vmem:[#allocation7 + $0x284] ss:$16 sps:$4 sm:$0xff]  }
  0x90   :  { %994 = vmatpush1.bf16.msra.mxu0 %v3693_v30  ;;  %v3783_v30 = vld [vmem:[#allocation7 + $0x80] ss:$16 sps:$4 sm:$0xff]  }
  0x91   :  { %1037 = vmatpush1.bf16.msra.mxu1 %v3696_v31  ;;  %995 = vmatprep.subr.bf16.mxu0 %v3701_v32  ;;  %v3786_v31 = vld [vmem:[#allocation7 + $0x280] ss:$16 sps:$4 sm:$0xff]   ;;  %v3791_v32 = vld [vmem:[#allocation7 + $0x64] ss:$16 sps:$4 sm:$0xff]  }
  0x92   :  { %1038 = vmatprep.subr.bf16.mxu1 %v3704_v33  ;;  %v3794_v33 = vld [vmem:[#allocation7 + $0x264] ss:$16 sps:$4 sm:$0xff]  }
  0x94   :  { %996 = vmatpush1.bf16.msra.mxu0 %v3699_v34  ;;  %v3789_v34 = vld [vmem:[#allocation7 + $0x60] ss:$16 sps:$4 sm:$0xff]  }
  0x95   :  { %1039 = vmatpush1.bf16.msra.mxu1 %v3702_v35  ;;  %997 = vmatprep.subr.bf16.mxu0 %v3707_v36  ;;  %v3792_v35 = vld [vmem:[#allocation7 + $0x260] ss:$16 sps:$4 sm:$0xff]   ;;  %v3797_v36 = vld [vmem:[#allocation7 + $0x44] ss:$16 sps:$4 sm:$0xff]  }
  0x96   :  { %1040 = vmatprep.subr.bf16.mxu1 %v3710_v37  ;;  %v3800_v37 = vld [vmem:[#allocation7 + $0x244] ss:$16 sps:$4 sm:$0xff]  }
  0x98   :  { %998 = vmatpush1.bf16.msra.mxu0 %v3705_v38  ;;  %v3795_v38 = vld [vmem:[#allocation7 + $0x40] ss:$16 sps:$4 sm:$0xff]  }
  0x99   :  { %1041 = vmatpush1.bf16.msra.mxu1 %v3708_v39  ;;  %999 = vmatprep.subr.bf16.mxu0 %v3713_v40  ;;  %v3798_v39 = vld [vmem:[#allocation7 + $0x240] ss:$16 sps:$4 sm:$0xff]   ;;  %v3803_v40 = vld [vmem:[#allocation7 + $0x24] ss:$16 sps:$4 sm:$0xff]  }
  0x9a   :  { %1042 = vmatprep.subr.bf16.mxu1 %v3716_v41  ;;  %v3806_v41 = vld [vmem:[#allocation7 + $0x224] ss:$16 sps:$4 sm:$0xff]  }
  0x9c   :  { %1000 = vmatpush1.bf16.msra.mxu0 %v3711_v42  ;;  %v3801_v42 = vld [vmem:[#allocation7 + $0x20] ss:$16 sps:$4 sm:$0xff]  }
  0x9d   :  { %1043 = vmatpush1.bf16.msra.mxu1 %v3714_v43  ;;  %1001 = vmatprep.subr.bf16.mxu0 %v3719_v44  ;;  %v3804_v43 = vld [vmem:[#allocation7 + $0x220] ss:$16 sps:$4 sm:$0xff]   ;;  %v3809_v44 = vld [vmem:[#allocation7 + $0x4] ss:$16 sps:$4 sm:$0xff]  }
  0x9e   :  { %1044 = vmatprep.subr.bf16.mxu1 %v3722_v45  ;;  %v3812_v45 = vld [vmem:[#allocation7 + $0x204] ss:$16 sps:$4 sm:$0xff]  }
  0xa0   :  { %1002 = vmatpush2.bf16.msra.mxu0 %v3717_v46  ;;  %v3807_v46 = vld [vmem:[#allocation7] ss:$16 sps:$4 sm:$0xff]  }
  0xa1   :  { %1045 = vmatpush2.bf16.msra.mxu1 %v3720_v47  ;;  %1003 = vmatprep.subr.bf16.mxu0 %v3725_v48  ;;  %v3810_v47 = vld [vmem:[#allocation7 + $0x200] ss:$16 sps:$4 sm:$0xff]   ;;  %v3815_v48 = vld [vmem:[#allocation7 + $0x1e4] ss:$16 sps:$4 sm:$0xff]  }
  0xa2   :  { %1046 = vmatprep.subr.bf16.mxu1 %v3728_v49  ;;  %v3818_v49 = vld [vmem:[#allocation7 + $0x3e4] ss:$16 sps:$4 sm:$0xff]  }
  0xa4   :  { %1004 = vmatpush2.bf16.msra.mxu0 %v3723_v50  ;;  %v3813_v50 = vld [vmem:[#allocation7 + $0x1e0] ss:$16 sps:$4 sm:$0xff]  }
  0xa5   :  { %1047 = vmatpush2.bf16.msra.mxu1 %v3726_v51  ;;  %1005 = vmatprep.subr.bf16.mxu0 %v3731_v52  ;;  %v3816_v51 = vld [vmem:[#allocation7 + $0x3e0] ss:$16 sps:$4 sm:$0xff]   ;;  %v3821_v52 = vld [vmem:[#allocation7 + $0x1c4] ss:$16 sps:$4 sm:$0xff]  }
  0xa6   :  { %1048 = vmatprep.subr.bf16.mxu1 %v3734_v55  ;;  %v3824_v55 = vld [vmem:[#allocation7 + $0x3c4] ss:$16 sps:$4 sm:$0xff]  }
  0xa8   :  { %1006 = vmatpush2.bf16.msra.mxu0 %v3729_v56  ;;  %v3819_v56 = vld [vmem:[#allocation7 + $0x1c0] ss:$16 sps:$4 sm:$0xff]  }
  0xa9   :  { %1049 = vmatpush2.bf16.msra.mxu1 %v3732_v57  ;;  %1007 = vmatprep.subr.bf16.mxu0 %v3737_v58  ;;  %v3822_v57 = vld [vmem:[#allocation7 + $0x3c0] ss:$16 sps:$4 sm:$0xff]   ;;  %v3827_v58 = vld [vmem:[#allocation7 + $0x1a4] ss:$16 sps:$4 sm:$0xff]  }
  0xaa   :  { %1050 = vmatprep.subr.bf16.mxu1 %v3740_v59  ;;  %v3830_v59 = vld [vmem:[#allocation7 + $0x3a4] ss:$16 sps:$4 sm:$0xff]  }
  0xac   :  { %1008 = vmatpush2.bf16.msra.mxu0 %v3735_v60  ;;  %v3825_v60 = vld [vmem:[#allocation7 + $0x1a0] ss:$16 sps:$4 sm:$0xff]  }
  0xad   :  { %1051 = vmatpush2.bf16.msra.mxu1 %v3738_v61  ;;  %1009 = vmatprep.subr.bf16.mxu0 %v3743_v62  ;;  %v3828_v61 = vld [vmem:[#allocation7 + $0x3a0] ss:$16 sps:$4 sm:$0xff]   ;;  %v3833_v62 = vld [vmem:[#allocation7 + $0x184] ss:$16 sps:$4 sm:$0xff]  }
  0xae   :  { %1052 = vmatprep.subr.bf16.mxu1 %v3746_v63  ;;  %v3836_v63 = vld [vmem:[#allocation7 + $0x384] ss:$16 sps:$4 sm:$0xff]  }
  0xb0   :  { %1010 = vmatpush2.bf16.msra.mxu0 %v3741_v0  ;;  %v3831_v0 = vld [vmem:[#allocation7 + $0x180] ss:$16 sps:$4 sm:$0xff]  }
  0xb1   :  { %1053 = vmatpush2.bf16.msra.mxu1 %v3744_v1  ;;  %1011 = vmatprep.subr.bf16.mxu0 %v3749_v2  ;;  %v3834_v1 = vld [vmem:[#allocation7 + $0x380] ss:$16 sps:$4 sm:$0xff]   ;;  %v3839_v2 = vld [vmem:[#allocation7 + $0x164] ss:$16 sps:$4 sm:$0xff]  }
  0xb2   :  { %1054 = vmatprep.subr.bf16.mxu1 %v3752_v3  ;;  %v3842_v3 = vld [vmem:[#allocation7 + $0x364] ss:$16 sps:$4 sm:$0xff]  }
  0xb4   :  { %1012 = vmatpush2.bf16.msra.mxu0 %v3747_v4  ;;  %v3837_v4 = vld [vmem:[#allocation7 + $0x160] ss:$16 sps:$4 sm:$0xff]  }
  0xb5   :  { %1055 = vmatpush2.bf16.msra.mxu1 %v3750_v5  ;;  %1013 = vmatprep.subr.bf16.mxu0 %v3755_v6  ;;  %v3840_v5 = vld [vmem:[#allocation7 + $0x360] ss:$16 sps:$4 sm:$0xff]   ;;  %v3845_v6 = vld [vmem:[#allocation7 + $0x144] ss:$16 sps:$4 sm:$0xff]  }
  0xb6   :  { %1056 = vmatprep.subr.bf16.mxu1 %v3758_v7  ;;  %v3848_v7 = vld [vmem:[#allocation7 + $0x344] ss:$16 sps:$4 sm:$0xff]  }
  0xb8   :  { %1014 = vmatpush2.bf16.msra.mxu0 %v3753_v8  ;;  %v3843_v8 = vld [vmem:[#allocation7 + $0x140] ss:$16 sps:$4 sm:$0xff]  }
  0xb9   :  { %1057 = vmatpush2.bf16.msra.mxu1 %v3756_v9  ;;  %1015 = vmatprep.subr.bf16.mxu0 %v3761_v10  ;;  %v3846_v9 = vld [vmem:[#allocation7 + $0x340] ss:$16 sps:$4 sm:$0xff]   ;;  %v3851_v10 = vld [vmem:[#allocation7 + $0x124] ss:$16 sps:$4 sm:$0xff]  }
  0xba   :  { %1058 = vmatprep.subr.bf16.mxu1 %v3764_v11  ;;  %v3854_v11 = vld [vmem:[#allocation7 + $0x324] ss:$16 sps:$4 sm:$0xff]  }
  0xbc   :  { %1016 = vmatpush2.bf16.msra.mxu0 %v3759_v14  ;;  %v3849_v14 = vld [vmem:[#allocation7 + $0x120] ss:$16 sps:$4 sm:$0xff]  }
  0xbd   :  { %1059 = vmatpush2.bf16.msra.mxu1 %v3762_v15  ;;  %1897 = vmatprep.subr.bf16.mxu0 %v3767_v16  ;;  %v3852_v15 = vld [vmem:[#allocation7 + $0x320] ss:$16 sps:$4 sm:$0xff]   ;;  %v3857_v16 = vld [vmem:[#allocation7 + $0x104] ss:$16 sps:$4 sm:$0xff]  }
  0xbe   :  { %1940 = vmatprep.subr.bf16.mxu1 %v3770_v17  ;;  %v3860_v17 = vld [vmem:[#allocation7 + $0x304] ss:$16 sps:$4 sm:$0xff]  }
  0xbf   :  { %1018 = vmatmul.mubr.bf16.vlgmr.msra.gmra.mxu0 %v4411_v12 }
  0xc0   :  { %1061 = vmatmul.mubr.bf16.vlgmr.msra.gmra.mxu1 %v4413_v13  ;;  %1898 = vmatpush1.bf16.msra.mxu0 %v3765_v18  ;;  %v3855_v18 = vld [vmem:[#allocation7 + $0x100] ss:$16 sps:$4 sm:$0xff]  }
  0xc1   :  { %1941 = vmatpush1.bf16.msra.mxu1 %v3768_v19  ;;  %1899 = vmatprep.subr.bf16.mxu0 %v3773_v20  ;;  %v3858_v19 = vld [vmem:[#allocation7 + $0x300] ss:$16 sps:$4 sm:$0xff]   ;;  %v3863_v20 = vld [vmem:[#allocation7 + $0xec] ss:$16 sps:$4 sm:$0xff]  }
  0xc2   :  { %1942 = vmatprep.subr.bf16.mxu1 %v3776_v21  ;;  %1929 = vmatprep.mubr.bf16.mxu0 %v4405_v53  ;;  %v3866_v21 = vld [vmem:[#allocation7 + $0x2ec] ss:$16 sps:$4 sm:$0xff]  }
  0xc3   :  { %1972 = vmatprep.mubr.bf16.mxu1 %v4407_v54 }
  0xc4   :  { %1900 = vmatpush1.bf16.msra.mxu0 %v3771_v22  ;;  %v3861_v22 = vld [vmem:[#allocation7 + $0xe8] ss:$16 sps:$4 sm:$0xff]  }
  0xc5   :  { %1943 = vmatpush1.bf16.msra.mxu1 %v3774_v23  ;;  %1901 = vmatprep.subr.bf16.mxu0 %v3779_v24  ;;  %v3864_v23 = vld [vmem:[#allocation7 + $0x2e8] ss:$16 sps:$4 sm:$0xff]   ;;  %v3869_v24 = vld [vmem:[#allocation7 + $0xcc] ss:$16 sps:$4 sm:$0xff]  }
  0xc6   :  { %1944 = vmatprep.subr.bf16.mxu1 %v3782_v25  ;;  %v3872_v25 = vld [vmem:[#allocation7 + $0x2cc] ss:$16 sps:$4 sm:$0xff]  }
  0xc8   :  { %1902 = vmatpush1.bf16.msra.mxu0 %v3777_v26  ;;  %v3867_v26 = vld [vmem:[#allocation7 + $0xc8] ss:$16 sps:$4 sm:$0xff]  }
  0xc9   :  { %1945 = vmatpush1.bf16.msra.mxu1 %v3780_v27  ;;  %1903 = vmatprep.subr.bf16.mxu0 %v3785_v28  ;;  %v3870_v27 = vld [vmem:[#allocation7 + $0x2c8] ss:$16 sps:$4 sm:$0xff]   ;;  %v3875_v28 = vld [vmem:[#allocation7 + $0xac] ss:$16 sps:$4 sm:$0xff]  }
  0xca   :  { %1946 = vmatprep.subr.bf16.mxu1 %v3788_v29  ;;  %v3878_v29 = vld [vmem:[#allocation7 + $0x2ac] ss:$16 sps:$4 sm:$0xff]  }
  0xcc   :  { %1904 = vmatpush1.bf16.msra.mxu0 %v3783_v30  ;;  %v3873_v30 = vld [vmem:[#allocation7 + $0xa8] ss:$16 sps:$4 sm:$0xff]  }
  0xcd   :  { %1947 = vmatpush1.bf16.msra.mxu1 %v3786_v31  ;;  %1905 = vmatprep.subr.bf16.mxu0 %v3791_v32  ;;  %v3876_v31 = vld [vmem:[#allocation7 + $0x2a8] ss:$16 sps:$4 sm:$0xff]   ;;  %v3881_v32 = vld [vmem:[#allocation7 + $0x8c] ss:$16 sps:$4 sm:$0xff]  }
  0xce   :  { %1948 = vmatprep.subr.bf16.mxu1 %v3794_v33  ;;  %v3884_v33 = vld [vmem:[#allocation7 + $0x28c] ss:$16 sps:$4 sm:$0xff]  }
  0xd0   :  { %1906 = vmatpush1.bf16.msra.mxu0 %v3789_v34  ;;  %v3879_v34 = vld [vmem:[#allocation7 + $0x88] ss:$16 sps:$4 sm:$0xff]  }
  0xd1   :  { %1949 = vmatpush1.bf16.msra.mxu1 %v3792_v35  ;;  %1907 = vmatprep.subr.bf16.mxu0 %v3797_v36  ;;  %v3882_v35 = vld [vmem:[#allocation7 + $0x288] ss:$16 sps:$4 sm:$0xff]   ;;  %v3887_v36 = vld [vmem:[#allocation7 + $0x6c] ss:$16 sps:$4 sm:$0xff]  }
  0xd2   :  { %1950 = vmatprep.subr.bf16.mxu1 %v3800_v37  ;;  %v3890_v37 = vld [vmem:[#allocation7 + $0x26c] ss:$16 sps:$4 sm:$0xff]  }
  0xd4   :  { %1908 = vmatpush1.bf16.msra.mxu0 %v3795_v38  ;;  %v3885_v38 = vld [vmem:[#allocation7 + $0x68] ss:$16 sps:$4 sm:$0xff]  }
  0xd5   :  { %1951 = vmatpush1.bf16.msra.mxu1 %v3798_v39  ;;  %1909 = vmatprep.subr.bf16.mxu0 %v3803_v40  ;;  %v3888_v39 = vld [vmem:[#allocation7 + $0x268] ss:$16 sps:$4 sm:$0xff]   ;;  %v3893_v40 = vld [vmem:[#allocation7 + $0x4c] ss:$16 sps:$4 sm:$0xff]  }
  0xd6   :  { %1952 = vmatprep.subr.bf16.mxu1 %v3806_v41  ;;  %v3896_v41 = vld [vmem:[#allocation7 + $0x24c] ss:$16 sps:$4 sm:$0xff]  }
  0xd8   :  { %1910 = vmatpush1.bf16.msra.mxu0 %v3801_v42  ;;  %v3891_v42 = vld [vmem:[#allocation7 + $0x48] ss:$16 sps:$4 sm:$0xff]  }
  0xd9   :  { %1953 = vmatpush1.bf16.msra.mxu1 %v3804_v43  ;;  %1911 = vmatprep.subr.bf16.mxu0 %v3809_v44  ;;  %v3894_v43 = vld [vmem:[#allocation7 + $0x248] ss:$16 sps:$4 sm:$0xff]   ;;  %v3899_v44 = vld [vmem:[#allocation7 + $0x2c] ss:$16 sps:$4 sm:$0xff]  }
  0xda   :  { %1954 = vmatprep.subr.bf16.mxu1 %v3812_v45  ;;  %v3902_v45 = vld [vmem:[#allocation7 + $0x22c] ss:$16 sps:$4 sm:$0xff]  }
  0xdc   :  { %1912 = vmatpush1.bf16.msra.mxu0 %v3807_v46  ;;  %v3897_v46 = vld [vmem:[#allocation7 + $0x28] ss:$16 sps:$4 sm:$0xff]  }
  0xdd   :  { %1955 = vmatpush1.bf16.msra.mxu1 %v3810_v47  ;;  %1913 = vmatprep.subr.bf16.mxu0 %v3815_v48  ;;  %v3900_v47 = vld [vmem:[#allocation7 + $0x228] ss:$16 sps:$4 sm:$0xff]   ;;  %v3905_v48 = vld [vmem:[#allocation7 + $0xc] ss:$16 sps:$4 sm:$0xff]  }
  0xde   :  { %1956 = vmatprep.subr.bf16.mxu1 %v3818_v49  ;;  %v3908_v49 = vld [vmem:[#allocation7 + $0x20c] ss:$16 sps:$4 sm:$0xff]  }
  0xe0   :  { %1914 = vmatpush2.bf16.msra.mxu0 %v3813_v50  ;;  %v3903_v50 = vld [vmem:[#allocation7 + $0x8] ss:$16 sps:$4 sm:$0xff]  }
  0xe1   :  { %1957 = vmatpush2.bf16.msra.mxu1 %v3816_v51  ;;  %1915 = vmatprep.subr.bf16.mxu0 %v3821_v52  ;;  %v3906_v51 = vld [vmem:[#allocation7 + $0x208] ss:$16 sps:$4 sm:$0xff]   ;;  %v3911_v52 = vld [vmem:[#allocation7 + $0x1ec] ss:$16 sps:$4 sm:$0xff]  }
  0xe2   :  { %1958 = vmatprep.subr.bf16.mxu1 %v3824_v55  ;;  %v3914_v55 = vld [vmem:[#allocation7 + $0x3ec] ss:$16 sps:$4 sm:$0xff]  }
  0xe4   :  { %1916 = vmatpush2.bf16.msra.mxu0 %v3819_v56  ;;  %v3909_v56 = vld [vmem:[#allocation7 + $0x1e8] ss:$16 sps:$4 sm:$0xff]  }
  0xe5   :  { %1959 = vmatpush2.bf16.msra.mxu1 %v3822_v57  ;;  %1917 = vmatprep.subr.bf16.mxu0 %v3827_v58  ;;  %v3912_v57 = vld [vmem:[#allocation7 + $0x3e8] ss:$16 sps:$4 sm:$0xff]   ;;  %v3917_v58 = vld [vmem:[#allocation7 + $0x1cc] ss:$16 sps:$4 sm:$0xff]  }
  0xe6   :  { %1960 = vmatprep.subr.bf16.mxu1 %v3830_v59  ;;  %v3920_v59 = vld [vmem:[#allocation7 + $0x3cc] ss:$16 sps:$4 sm:$0xff]  }
  0xe8   :  { %1918 = vmatpush2.bf16.msra.mxu0 %v3825_v60  ;;  %v3915_v60 = vld [vmem:[#allocation7 + $0x1c8] ss:$16 sps:$4 sm:$0xff]  }
  0xe9   :  { %1961 = vmatpush2.bf16.msra.mxu1 %v3828_v61  ;;  %1919 = vmatprep.subr.bf16.mxu0 %v3833_v62  ;;  %v3918_v61 = vld [vmem:[#allocation7 + $0x3c8] ss:$16 sps:$4 sm:$0xff]   ;;  %v3923_v62 = vld [vmem:[#allocation7 + $0x1ac] ss:$16 sps:$4 sm:$0xff]  }
  0xea   :  { %1962 = vmatprep.subr.bf16.mxu1 %v3836_v63  ;;  %v3926_v63 = vld [vmem:[#allocation7 + $0x3ac] ss:$16 sps:$4 sm:$0xff]  }
  0xec   :  { %1920 = vmatpush2.bf16.msra.mxu0 %v3831_v0  ;;  %v3921_v0 = vld [vmem:[#allocation7 + $0x1a8] ss:$16 sps:$4 sm:$0xff]  }
  0xed   :  { %1963 = vmatpush2.bf16.msra.mxu1 %v3834_v1  ;;  %1921 = vmatprep.subr.bf16.mxu0 %v3839_v2  ;;  %v3924_v1 = vld [vmem:[#allocation7 + $0x3a8] ss:$16 sps:$4 sm:$0xff]   ;;  %v3929_v2 = vld [vmem:[#allocation7 + $0x18c] ss:$16 sps:$4 sm:$0xff]  }
  0xee   :  { %1964 = vmatprep.subr.bf16.mxu1 %v3842_v3  ;;  %v3932_v3 = vld [vmem:[#allocation7 + $0x38c] ss:$16 sps:$4 sm:$0xff]  }
  0xf0   :  { %1922 = vmatpush2.bf16.msra.mxu0 %v3837_v4  ;;  %v3927_v4 = vld [vmem:[#allocation7 + $0x188] ss:$16 sps:$4 sm:$0xff]  }
  0xf1   :  { %1965 = vmatpush2.bf16.msra.mxu1 %v3840_v5  ;;  %1923 = vmatprep.subr.bf16.mxu0 %v3845_v6  ;;  %v3930_v5 = vld [vmem:[#allocation7 + $0x388] ss:$16 sps:$4 sm:$0xff]   ;;  %v3935_v6 = vld [vmem:[#allocation7 + $0x16c] ss:$16 sps:$4 sm:$0xff]  }
  0xf2   :  { %1966 = vmatprep.subr.bf16.mxu1 %v3848_v7  ;;  %v3938_v7 = vld [vmem:[#allocation7 + $0x36c] ss:$16 sps:$4 sm:$0xff]  }
  0xf4   :  { %1924 = vmatpush2.bf16.msra.mxu0 %v3843_v8  ;;  %v3933_v8 = vld [vmem:[#allocation7 + $0x168] ss:$16 sps:$4 sm:$0xff]  }
  0xf5   :  { %1967 = vmatpush2.bf16.msra.mxu1 %v3846_v9  ;;  %1925 = vmatprep.subr.bf16.mxu0 %v3851_v10  ;;  %v3936_v9 = vld [vmem:[#allocation7 + $0x368] ss:$16 sps:$4 sm:$0xff]   ;;  %v3941_v10 = vld [vmem:[#allocation7 + $0x14c] ss:$16 sps:$4 sm:$0xff]  }
  0xf6   :  { %1968 = vmatprep.subr.bf16.mxu1 %v3854_v11  ;;  %v3944_v11 = vld [vmem:[#allocation7 + $0x34c] ss:$16 sps:$4 sm:$0xff]  }
  0xf8   :  { %1926 = vmatpush2.bf16.msra.mxu0 %v3849_v14  ;;  %v3939_v14 = vld [vmem:[#allocation7 + $0x148] ss:$16 sps:$4 sm:$0xff]  }
  0xf9   :  { %1969 = vmatpush2.bf16.msra.mxu1 %v3852_v15  ;;  %1927 = vmatprep.subr.bf16.mxu0 %v3857_v16  ;;  %v3942_v15 = vld [vmem:[#allocation7 + $0x348] ss:$16 sps:$4 sm:$0xff]   ;;  %v239_v16 = vlaneseq }
  0xfa   :  { %1970 = vmatprep.subr.bf16.mxu1 %v3860_v17  ;;  %v3947_v17 = vld [vmem:[#allocation7 + $0x12c] ss:$16 sps:$4 sm:$0xff]  }
  0xfc   :  { %1928 = vmatpush2.bf16.msra.mxu0 %v3855_v18  ;;  %v3950_v18 = vld [vmem:[#allocation7 + $0x32c] ss:$16 sps:$4 sm:$0xff]  }
  0xfd   :  { %1971 = vmatpush2.bf16.msra.mxu1 %v3858_v19  ;;  %1983 = vmatprep.subr.bf16.mxu0 %v3863_v20  ;;  %v3945_v19 = vld [vmem:[#allocation7 + $0x128] ss:$16 sps:$4 sm:$0xff]  }
  0xfe   :  { %2026 = vmatprep.subr.bf16.mxu1 %v3866_v21  ;;  %v3948_v20 = vld [vmem:[#allocation7 + $0x328] ss:$16 sps:$4 sm:$0xff]   ;;  %v4427_v21 = vshrl.u32 %v239_v16, 7  ;;  %v3990_v16 = vld [vmem:[#allocation8 + $0x240] ss:$16 sps:$4 sm:$0xff]  }
  0xff   :  { %1930 = vmatmul.mubr.bf16.vlgmr.msra.gmra.mxu0 %v4411_v12 }
 0x100   :  { %1973 = vmatmul.mubr.bf16.vlgmr.msra.gmra.mxu1 %v4413_v13  ;;  %1984 = vmatpush1.bf16.msra.mxu0 %v3861_v22  ;;  %v3953_v22 = vld [vmem:[#allocation7 + $0x10c] ss:$16 sps:$4 sm:$0xff]  }
 0x101   :  { %2027 = vmatpush1.bf16.msra.mxu1 %v3864_v23  ;;  %1985 = vmatprep.subr.bf16.mxu0 %v3869_v24  ;;  %v3956_v23 = vld [vmem:[#allocation7 + $0x30c] ss:$16 sps:$4 sm:$0xff]   ;;  %v3951_v24 = vld [vmem:[#allocation7 + $0x108] ss:$16 sps:$4 sm:$0xff]  }
 0x102   :  { %2028 = vmatprep.subr.bf16.mxu1 %v3872_v25  ;;  %2015 = vmatprep.mubr.bf16.mxu0 %v4405_v53  ;;  %v3954_v25 = vld [vmem:[#allocation7 + $0x308] ss:$16 sps:$4 sm:$0xff]  }
 0x103   :  { %2058 = vmatprep.mubr.bf16.mxu1 %v4407_v54 }
 0x104   :  { %1986 = vmatpush1.bf16.msra.mxu0 %v3867_v26  ;;  %v4432_v26 = vld [vmem:[%s4497_s4] sm:$0xf] }
 0x105   :  { %2029 = vmatpush1.bf16.msra.mxu1 %v3870_v27  ;;  %1987 = vmatprep.subr.bf16.mxu0 %v3875_v28  ;;  %v4435_v27 = vsub.s32 0, %v4427_v21  ;;  %v3959_v28 = vld [vmem:[#allocation8 + $0xe4] ss:$16 sps:$4 sm:$0xff]  }
 0x106   :  { %2030 = vmatprep.subr.bf16.mxu1 %v3878_v29  ;;  %v3962_v29 = vld [vmem:[#allocation8 + $0x2e4] ss:$16 sps:$4 sm:$0xff]  }
 0x108   :  { %1988 = vmatpush1.bf16.msra.mxu0 %v3873_v30  ;;  %v4438_v30 = vsub.s32 1, %v4427_v21 }
 0x109   :  { %2031 = vmatpush1.bf16.msra.mxu1 %v3876_v31  ;;  %1989 = vmatprep.subr.bf16.mxu0 %v3881_v32  ;;  %v3957_v31 = vld [vmem:[#allocation8 + $0xe0] ss:$16 sps:$4 sm:$0xff]   ;;  %v242_v32 = vrot.slane %v4432_v26, %v4435_v27 }
 0x10a   :  { %2032 = vmatprep.subr.bf16.mxu1 %v3884_v33  ;;  %v3960_v33 = vld [vmem:[#allocation8 + $0x2e0] ss:$16 sps:$4 sm:$0xff]  }
 0x10c   :  { %1990 = vmatpush1.bf16.msra.mxu0 %v3879_v34  ;;  %v3965_v34 = vld [vmem:[#allocation8 + $0xc4] ss:$16 sps:$4 sm:$0xff]  }
 0x10d   :  { %2033 = vmatpush1.bf16.msra.mxu1 %v3882_v35  ;;  %1991 = vmatprep.subr.bf16.mxu0 %v3887_v36  ;;  %v3968_v35 = vld [vmem:[#allocation8 + $0x2c4] ss:$16 sps:$4 sm:$0xff]   ;;  %v246_v36 = vrot.slane %v4432_v26, %v4438_v30 }
 0x10e   :  { %2034 = vmatprep.subr.bf16.mxu1 %v3890_v37 }
 0x110   :  { %1992 = vmatpush1.bf16.msra.mxu0 %v3885_v38 }
 0x111   :  { %2035 = vmatpush1.bf16.msra.mxu1 %v3888_v39  ;;  %1993 = vmatprep.subr.bf16.mxu0 %v3893_v40  ;;  %v3963_v40 = vld [vmem:[#allocation8 + $0xc0] ss:$16 sps:$4 sm:$0xff]  }
 0x112   :  { %2036 = vmatprep.subr.bf16.mxu1 %v3896_v41  ;;  %v3966_v41 = vld [vmem:[#allocation8 + $0x2c0] ss:$16 sps:$4 sm:$0xff]  }
 0x114   :  { %1994 = vmatpush1.bf16.msra.mxu0 %v3891_v42 }
 0x115   :  { %2037 = vmatpush1.bf16.msra.mxu1 %v3894_v43  ;;  %1995 = vmatprep.subr.bf16.mxu0 %v3899_v44  ;;  %v3971_v44 = vld [vmem:[#allocation8 + $0xa4] ss:$16 sps:$4 sm:$0xff]  }
 0x116   :  { %2038 = vmatprep.subr.bf16.mxu1 %v3902_v45  ;;  %v3974_v45 = vld [vmem:[#allocation8 + $0x2a4] ss:$16 sps:$4 sm:$0xff]  }
 0x118   :  { %1996 = vmatpush1.bf16.msra.mxu0 %v3897_v46 }
 0x119   :  { %2039 = vmatpush1.bf16.msra.mxu1 %v3900_v47  ;;  %1997 = vmatprep.subr.bf16.mxu0 %v3905_v48 }
 0x11a   :  { %2040 = vmatprep.subr.bf16.mxu1 %v3908_v49 }
 0x11c   :  { %1998 = vmatpush1.bf16.msra.mxu0 %v3903_v50 }
 0x11d   :  { %2041 = vmatpush1.bf16.msra.mxu1 %v3906_v51  ;;  %1999 = vmatprep.subr.bf16.mxu0 %v3911_v52 }
 0x11e   :  { %2042 = vmatprep.subr.bf16.mxu1 %v3914_v55  ;;  %v3969_v55 = vld [vmem:[#allocation8 + $0xa0] ss:$16 sps:$4 sm:$0xff]  }
 0x120   :  { %2000 = vmatpush2.bf16.msra.mxu0 %v3909_v56  ;;  %v3972_v56 = vld [vmem:[#allocation8 + $0x2a0] ss:$16 sps:$4 sm:$0xff]  }
 0x121   :  { %2043 = vmatpush2.bf16.msra.mxu1 %v3912_v57  ;;  %2001 = vmatprep.subr.bf16.mxu0 %v3917_v58  ;;  %v3977_v58 = vld [vmem:[#allocation8 + $0x84] ss:$16 sps:$4 sm:$0xff]  }
 0x122   :  { %2044 = vmatprep.subr.bf16.mxu1 %v3920_v59  ;;  %v3980_v59 = vld [vmem:[#allocation8 + $0x284] ss:$16 sps:$4 sm:$0xff]  }
 0x124   :  { %2002 = vmatpush2.bf16.msra.mxu0 %v3915_v60 }
 0x125   :  { %2045 = vmatpush2.bf16.msra.mxu1 %v3918_v61  ;;  %2003 = vmatprep.subr.bf16.mxu0 %v3923_v62 }
 0x126   :  { %2046 = vmatprep.subr.bf16.mxu1 %v3926_v63 }
 0x128   :  { %2004 = vmatpush2.bf16.msra.mxu0 %v3921_v0 }
 0x129   :  { %2047 = vmatpush2.bf16.msra.mxu1 %v3924_v1  ;;  %2005 = vmatprep.subr.bf16.mxu0 %v3929_v2  ;;  %v3975_v2 = vld [vmem:[#allocation8 + $0x80] ss:$16 sps:$4 sm:$0xff]  }
 0x12a   :  { %2048 = vmatprep.subr.bf16.mxu1 %v3932_v3  ;;  %v3978_v3 = vld [vmem:[#allocation8 + $0x280] ss:$16 sps:$4 sm:$0xff]  }
 0x12c   :  { %2006 = vmatpush2.bf16.msra.mxu0 %v3927_v4  ;;  %v3983_v4 = vld [vmem:[#allocation8 + $0x64] ss:$16 sps:$4 sm:$0xff]  }
 0x12d   :  { %2049 = vmatpush2.bf16.msra.mxu1 %v3930_v5  ;;  %2007 = vmatprep.subr.bf16.mxu0 %v3935_v6  ;;  %v3986_v5 = vld [vmem:[#allocation8 + $0x264] ss:$16 sps:$4 sm:$0xff]  }
 0x12e   :  { %2050 = vmatprep.subr.bf16.mxu1 %v3938_v7 }
 0x130   :  { %2008 = vmatpush2.bf16.msra.mxu0 %v3933_v8 }
 0x131   :  { %2051 = vmatpush2.bf16.msra.mxu1 %v3936_v9  ;;  %2009 = vmatprep.subr.bf16.mxu0 %v3941_v10  ;;  %v3981_v9 = vld [vmem:[#allocation8 + $0x60] ss:$16 sps:$4 sm:$0xff]  }
 0x132   :  { %2052 = vmatprep.subr.bf16.mxu1 %v3944_v11  ;;  %v3984_v10 = vld [vmem:[#allocation8 + $0x260] ss:$16 sps:$4 sm:$0xff]   ;;  %v3989_v11 = vld [vmem:[#allocation8 + $0x44] ss:$16 sps:$4 sm:$0xff]  }
 0x134   :  { %2010 = vmatpush2.bf16.msra.mxu0 %v3939_v14  ;;  %v3992_v14 = vld [vmem:[#allocation8 + $0x244] ss:$16 sps:$4 sm:$0xff]  }
 0x135   :  { %2053 = vmatpush2.bf16.msra.mxu1 %v3942_v15  ;;  %2011 = vmatprep.subr.bf16.mxu0 %v3947_v17  ;;  %v3987_v15 = vld [vmem:[#allocation8 + $0x40] ss:$16 sps:$4 sm:$0xff]   ;;  %v3995_v17 = vld [vmem:[#allocation8 + $0x24] ss:$16 sps:$4 sm:$0xff]  }
 0x136   :  { %2054 = vmatprep.subr.bf16.mxu1 %v3950_v18  ;;  %v3998_v18 = vld [vmem:[#allocation8 + $0x224] ss:$16 sps:$4 sm:$0xff]  }
 0x138   :  { %2012 = vmatpush2.bf16.msra.mxu0 %v3945_v19  ;;  %v3993_v19 = vld [vmem:[#allocation8 + $0x20] ss:$16 sps:$4 sm:$0xff]  }
 0x139   :  { %2055 = vmatpush2.bf16.msra.mxu1 %v3948_v20  ;;  %2013 = vmatprep.subr.bf16.mxu0 %v3953_v22  ;;  %v3996_v20 = vld [vmem:[#allocation8 + $0x220] ss:$16 sps:$4 sm:$0xff]   ;;  %v4001_v22 = vld [vmem:[#allocation8 + $0x4] ss:$16 sps:$4 sm:$0xff]  }
 0x13a   :  { %2056 = vmatprep.subr.bf16.mxu1 %v3956_v23  ;;  %v4004_v23 = vld [vmem:[#allocation8 + $0x204] ss:$16 sps:$4 sm:$0xff]  }
 0x13c   :  { %2014 = vmatpush2.bf16.msra.mxu0 %v3951_v24  ;;  %v3999_v24 = vld [vmem:[#allocation8] ss:$16 sps:$4 sm:$0xff]  }
 0x13d   :  { %2057 = vmatpush2.bf16.msra.mxu1 %v3954_v25  ;;  %2895 = vmatprep.subr.bf16.mxu0 %v3959_v28  ;;  %v4002_v25 = vld [vmem:[#allocation8 + $0x200] ss:$16 sps:$4 sm:$0xff]   ;;  %v4007_v28 = vld [vmem:[#allocation8 + $0x1e4] ss:$16 sps:$4 sm:$0xff]  }
 0x13e   :  { %2938 = vmatprep.subr.bf16.mxu1 %v3962_v29  ;;  %v4010_v29 = vld [vmem:[#allocation8 + $0x3e4] ss:$16 sps:$4 sm:$0xff]  }
 0x13f   :  { %v933_v37 = vpop.f32.mrf.mxu0  ;;  %2016 = vmatmul.mubr.bf16.vlgmr.msra.gmra.mxu0 %v4411_v12 }
 0x140   :  { %v976_v38 = vpop.f32.mrf.mxu1  ;;  %2059 = vmatmul.mubr.bf16.vlgmr.msra.gmra.mxu1 %v4413_v13  ;;  %v934_v39 = vadd.f32 %v933_v37, %v242_v32  ;;  %2896 = vmatpush1.bf16.msra.mxu0 %v3957_v31  ;;  %v4005_v31 = vld [vmem:[#allocation8 + $0x1e0] ss:$16 sps:$4 sm:$0xff]   ;;  %v4019_v37 = vld [vmem:[#allocation8 + $0x1a4] ss:$16 sps:$4 sm:$0xff]  }
 0x141   :  { %2939 = vmatpush1.bf16.msra.mxu1 %v3960_v33  ;;  %v935_v42 = vpop.f32.mrf.mxu0  ;;  %2897 = vmatprep.subr.bf16.mxu0 %v3965_v34  ;;  %v4013_v33 = vld [vmem:[#allocation8 + $0x1c4] ss:$16 sps:$4 sm:$0xff]  }
 0x142   :  { %v978_v43 = vpop.f32.mrf.mxu1  ;;  %2940 = vmatprep.subr.bf16.mxu1 %v3968_v35  ;;  %v977_v46 = vadd.f32 %v976_v38, %v934_v39  ;;  %v936_v47 = vadd.f32 %v935_v42, %v246_v36  ;;  %2927 = vmatprep.mubr.bf16.mxu0 %v4405_v53  ;;  %v4016_v34 = vld [vmem:[#allocation8 + $0x3c4] ss:$16 sps:$4 sm:$0xff]   ;;  %v4011_v35 = vld [vmem:[#allocation8 + $0x1c0] ss:$16 sps:$4 sm:$0xff]  }
 0x143   :  { %2970 = vmatprep.mubr.bf16.mxu1 %v4407_v54  ;;  %v937_v48 = vpop.f32.mrf.mxu0  ;;  %v4022_v38 = vld [vmem:[#allocation8 + $0x3a4] ss:$16 sps:$4 sm:$0xff]   ;;  %v4017_v39 = vld [vmem:[#allocation8 + $0x1a0] ss:$16 sps:$4 sm:$0xff]  }
 0x144   :  { %v980_v49 = vpop.f32.mrf.mxu1  ;;  %v1071_v50 = vmax.f32 %v977_v46, 0.0  ;;  %v979_v51 = vadd.f32 %v978_v43, %v936_v47  ;;  %v938_v52 = vadd.f32 %v937_v48, %v242_v32  ;;  %2898 = vmatpush1.bf16.msra.mxu0 %v3963_v40  ;;  %v4008_v32 = vld [vmem:[#allocation8 + $0x3e0] ss:$16 sps:$4 sm:$0xff]   ;;  %v4028_v42 = vld [vmem:[#allocation8 + $0x384] ss:$16 sps:$4 sm:$0xff]  }
 0x145   :  { %2941 = vmatpush1.bf16.msra.mxu1 %v3966_v41  ;;  %v939_v57 = vpop.f32.mrf.mxu0  ;;  %2899 = vmatprep.subr.bf16.mxu0 %v3971_v44  ;;  %v4020_v40 = vld [vmem:[#allocation8 + $0x3a0] ss:$16 sps:$4 sm:$0xff]   ;;  %v4025_v41 = vld [vmem:[#allocation8 + $0x184] ss:$16 sps:$4 sm:$0xff]  }
 0x146   :  { %2942 = vmatprep.subr.bf16.mxu1 %v3974_v45  ;;  %v1072_v60 = vmax.f32 %v979_v51, 0.0  ;;  %v981_v61 = vadd.f32 %v980_v49, %v938_v52  ;;  %v940_v62 = vadd.f32 %v939_v57, %v246_v36  ;;  %v982_v63 = vpop.f32.mrf.mxu1  ;;  %v4014_v36 = vld [vmem:[#allocation8 + $0x3c0] ss:$16 sps:$4 sm:$0xff]   ;;  %v4031_v45 = vld [vmem:[#allocation8 + $0x164] ss:$16 sps:$4 sm:$0xff]  }
 0x147   :  { %v4023_v43 = vld [vmem:[#allocation8 + $0x180] ss:$16 sps:$4 sm:$0xff]   ;;  %v4034_v46 = vld [vmem:[#allocation8 + $0x364] ss:$16 sps:$4 sm:$0xff]  }
 0x148   :  { %v3549_v0 = vpack.c.bf16 %v1072_v60, %v1071_v50  ;;  %v983_v1 = vadd.f32 %v982_v63, %v940_v62  ;;  %2900 = vmatpush1.bf16.msra.mxu0 %v3969_v55  ;;  %v1075_v6 = vmax.f32 %v981_v61, 0.0  ;;  %v4026_v44 = vld [vmem:[#allocation8 + $0x380] ss:$16 sps:$4 sm:$0xff]   ;;  %v4037_v49 = vld [vmem:[#allocation8 + $0x144] ss:$16 sps:$4 sm:$0xff]   ;;  %v4449_v63 = vsub.s32 2, %v4427_v21 }
 0x149   :  { %2943 = vmatpush1.bf16.msra.mxu1 %v3972_v56  ;;  %2901 = vmatprep.subr.bf16.mxu0 %v3977_v58  ;;  %v4029_v47 = vld [vmem:[#allocation8 + $0x160] ss:$16 sps:$4 sm:$0xff]   ;;  %v4040_v50 = vld [vmem:[#allocation8 + $0x344] ss:$16 sps:$4 sm:$0xff]  }
 0x14a   :  { %2944 = vmatprep.subr.bf16.mxu1 %v3980_v59  ;;  %1103 = vst [vmem:[#allocation11] sm:$0xff] %v3549_v0  ;;  %v1076_v7 = vmax.f32 %v983_v1, 0.0  ;;  %v4032_v48 = vld [vmem:[#allocation8 + $0x360] ss:$16 sps:$4 sm:$0xff]   ;;  %v4043_v55 = vld [vmem:[#allocation8 + $0x124] ss:$16 sps:$4 sm:$0xff]  }
 0x14b   :  { %v4035_v51 = vld [vmem:[#allocation8 + $0x140] ss:$16 sps:$4 sm:$0xff]   ;;  %v4046_v56 = vld [vmem:[#allocation8 + $0x324] ss:$16 sps:$4 sm:$0xff]   ;;  %v4055_v0 = vld [vmem:[#allocation8 + $0xec] ss:$16 sps:$4 sm:$0xff]  }
 0x14c   :  { %v3551_v8 = vpack.c.bf16 %v1076_v7, %v1075_v6  ;;  %2902 = vmatpush1.bf16.msra.mxu0 %v3975_v2  ;;  %v4038_v52 = vld [vmem:[#allocation8 + $0x340] ss:$16 sps:$4 sm:$0xff]   ;;  %v4049_v59 = vld [vmem:[#allocation8 + $0x104] ss:$16 sps:$4 sm:$0xff]   ;;  %v4058_v1 = vld [vmem:[#allocation8 + $0x2ec] ss:$16 sps:$4 sm:$0xff]  }
 0x14d   :  { %2945 = vmatpush1.bf16.msra.mxu1 %v3978_v3  ;;  %2903 = vmatprep.subr.bf16.mxu0 %v3983_v4  ;;  %v4041_v57 = vld [vmem:[#allocation8 + $0x120] ss:$16 sps:$4 sm:$0xff]   ;;  %v4052_v60 = vld [vmem:[#allocation8 + $0x304] ss:$16 sps:$4 sm:$0xff]   ;;  %v4452_v2 = vsub.s32 3, %v4427_v21  ;;  %v250_v3 = vrot.slane %v4432_v26, %v4449_v63 }
 0x14e   :  { %2946 = vmatprep.subr.bf16.mxu1 %v3986_v5  ;;  %1105 = vst [vmem:[#allocation11 + $0x10] sm:$0xff] %v3551_v8  ;;  %v4044_v58 = vld [vmem:[#allocation8 + $0x320] ss:$16 sps:$4 sm:$0xff]   ;;  %v4053_v4 = vld [vmem:[#allocation8 + $0xe8] ss:$16 sps:$4 sm:$0xff]  }
 0x14f   :  { %v4047_v61 = vld [vmem:[#allocation8 + $0x100] ss:$16 sps:$4 sm:$0xff]   ;;  %v4056_v5 = vld [vmem:[#allocation8 + $0x2e8] ss:$16 sps:$4 sm:$0xff]   ;;  %v4061_v6 = vld [vmem:[#allocation8 + $0xcc] ss:$16 sps:$4 sm:$0xff]   ;;  %v254_v8 = vrot.slane %v4432_v26, %v4452_v2 }
 0x150   :  { %2904 = vmatpush1.bf16.msra.mxu0 %v3981_v9  ;;  %v4050_v62 = vld [vmem:[#allocation8 + $0x300] ss:$16 sps:$4 sm:$0xff]   ;;  %v4064_v7 = vld [vmem:[#allocation8 + $0x2cc] ss:$16 sps:$4 sm:$0xff]  }
 0x151   :  { %2947 = vmatpush1.bf16.msra.mxu1 %v3984_v10  ;;  %2905 = vmatprep.subr.bf16.mxu0 %v3989_v11  ;;  %v4059_v11 = vld [vmem:[#allocation8 + $0xc8] ss:$16 sps:$4 sm:$0xff]  }
 0x152   :  { %2948 = vmatprep.subr.bf16.mxu1 %v3992_v14  ;;  %v4062_v14 = vld [vmem:[#allocation8 + $0x2c8] ss:$16 sps:$4 sm:$0xff]  }
 0x154   :  { %2906 = vmatpush1.bf16.msra.mxu0 %v3987_v15 }
 0x155   :  { %2949 = vmatpush1.bf16.msra.mxu1 %v3990_v16  ;;  %2907 = vmatprep.subr.bf16.mxu0 %v3995_v17  ;;  %v4067_v17 = vld [vmem:[#allocation8 + $0xac] ss:$16 sps:$4 sm:$0xff]  }
 0x156   :  { %2950 = vmatprep.subr.bf16.mxu1 %v3998_v18  ;;  %v4070_v18 = vld [vmem:[#allocation8 + $0x2ac] ss:$16 sps:$4 sm:$0xff]  }
 0x158   :  { %2908 = vmatpush1.bf16.msra.mxu0 %v3993_v19 }
 0x159   :  { %2951 = vmatpush1.bf16.msra.mxu1 %v3996_v20  ;;  %2909 = vmatprep.subr.bf16.mxu0 %v4001_v22 }
 0x15a   :  { %2952 = vmatprep.subr.bf16.mxu1 %v4004_v23 }
 0x15c   :  { %2910 = vmatpush1.bf16.msra.mxu0 %v3999_v24 }
 0x15d   :  { %2953 = vmatpush1.bf16.msra.mxu1 %v4002_v25  ;;  %2911 = vmatprep.subr.bf16.mxu0 %v4007_v28  ;;  %v4065_v28 = vld [vmem:[#allocation8 + $0xa8] ss:$16 sps:$4 sm:$0xff]  }
 0x15e   :  { %2954 = vmatprep.subr.bf16.mxu1 %v4010_v29  ;;  %v4068_v29 = vld [vmem:[#allocation8 + $0x2a8] ss:$16 sps:$4 sm:$0xff]  }
 0x160   :  { %2912 = vmatpush2.bf16.msra.mxu0 %v4005_v31 }
 0x161   :  { %2955 = vmatpush2.bf16.msra.mxu1 %v4008_v32  ;;  %2913 = vmatprep.subr.bf16.mxu0 %v4013_v33  ;;  %v4073_v32 = vld [vmem:[#allocation8 + $0x8c] ss:$16 sps:$4 sm:$0xff]  }
 0x162   :  { %2956 = vmatprep.subr.bf16.mxu1 %v4016_v34  ;;  %v4076_v33 = vld [vmem:[#allocation8 + $0x28c] ss:$16 sps:$4 sm:$0xff]  }
 0x164   :  { %2914 = vmatpush2.bf16.msra.mxu0 %v4011_v35 }
 0x165   :  { %2957 = vmatpush2.bf16.msra.mxu1 %v4014_v36  ;;  %2915 = vmatprep.subr.bf16.mxu0 %v4019_v37 }
 0x166   :  { %2958 = vmatprep.subr.bf16.mxu1 %v4022_v38  ;;  %v4071_v38 = vld [vmem:[#allocation8 + $0x88] ss:$16 sps:$4 sm:$0xff]  }
 0x168   :  { %2916 = vmatpush2.bf16.msra.mxu0 %v4017_v39  ;;  %v4074_v39 = vld [vmem:[#allocation8 + $0x288] ss:$16 sps:$4 sm:$0xff]  }
 0x169   :  { %2959 = vmatpush2.bf16.msra.mxu1 %v4020_v40  ;;  %2917 = vmatprep.subr.bf16.mxu0 %v4025_v41  ;;  %v4079_v40 = vld [vmem:[#allocation8 + $0x6c] ss:$16 sps:$4 sm:$0xff]  }
 0x16a   :  { %2960 = vmatprep.subr.bf16.mxu1 %v4028_v42  ;;  %v4082_v41 = vld [vmem:[#allocation8 + $0x26c] ss:$16 sps:$4 sm:$0xff]  }
 0x16c   :  { %2918 = vmatpush2.bf16.msra.mxu0 %v4023_v43 }
 0x16d   :  { %2961 = vmatpush2.bf16.msra.mxu1 %v4026_v44  ;;  %2919 = vmatprep.subr.bf16.mxu0 %v4031_v45  ;;  %v4077_v45 = vld [vmem:[#allocation8 + $0x68] ss:$16 sps:$4 sm:$0xff]  }
 0x16e   :  { %2962 = vmatprep.subr.bf16.mxu1 %v4034_v46  ;;  %v4080_v46 = vld [vmem:[#allocation8 + $0x268] ss:$16 sps:$4 sm:$0xff]  }
 0x170   :  { %2920 = vmatpush2.bf16.msra.mxu0 %v4029_v47  ;;  %v4085_v47 = vld [vmem:[#allocation8 + $0x4c] ss:$16 sps:$4 sm:$0xff]  }
 0x171   :  { %2963 = vmatpush2.bf16.msra.mxu1 %v4032_v48  ;;  %2921 = vmatprep.subr.bf16.mxu0 %v4037_v49  ;;  %v4088_v48 = vld [vmem:[#allocation8 + $0x24c] ss:$16 sps:$4 sm:$0xff]   ;;  %v4083_v49 = vld [vmem:[#allocation8 + $0x48] ss:$16 sps:$4 sm:$0xff]  }
 0x172   :  { %2964 = vmatprep.subr.bf16.mxu1 %v4040_v50  ;;  %v4086_v50 = vld [vmem:[#allocation8 + $0x248] ss:$16 sps:$4 sm:$0xff]  }
 0x174   :  { %2922 = vmatpush2.bf16.msra.mxu0 %v4035_v51  ;;  %v4091_v51 = vld [vmem:[#allocation8 + $0x2c] ss:$16 sps:$4 sm:$0xff]  }
 0x175   :  { %2965 = vmatpush2.bf16.msra.mxu1 %v4038_v52  ;;  %2923 = vmatprep.subr.bf16.mxu0 %v4043_v55  ;;  %v4094_v52 = vld [vmem:[#allocation8 + $0x22c] ss:$16 sps:$4 sm:$0xff]   ;;  %v4089_v55 = vld [vmem:[#allocation8 + $0x28] ss:$16 sps:$4 sm:$0xff]  }
 0x176   :  { %2966 = vmatprep.subr.bf16.mxu1 %v4046_v56  ;;  %v4092_v56 = vld [vmem:[#allocation8 + $0x228] ss:$16 sps:$4 sm:$0xff]  }
 0x178   :  { %2924 = vmatpush2.bf16.msra.mxu0 %v4041_v57  ;;  %v4097_v57 = vld [vmem:[#allocation8 + $0xc] ss:$16 sps:$4 sm:$0xff]  }
 0x179   :  { %2967 = vmatpush2.bf16.msra.mxu1 %v4044_v58  ;;  %2925 = vmatprep.subr.bf16.mxu0 %v4049_v59  ;;  %v4100_v58 = vld [vmem:[#allocation8 + $0x20c] ss:$16 sps:$4 sm:$0xff]   ;;  %v4095_v59 = vld [vmem:[#allocation8 + $0x8] ss:$16 sps:$4 sm:$0xff]  }
 0x17a   :  { %2968 = vmatprep.subr.bf16.mxu1 %v4052_v60  ;;  %v4098_v60 = vld [vmem:[#allocation8 + $0x208] ss:$16 sps:$4 sm:$0xff]  }
 0x17c   :  { %2926 = vmatpush2.bf16.msra.mxu0 %v4047_v61  ;;  %v4103_v61 = vld [vmem:[#allocation8 + $0x1ec] ss:$16 sps:$4 sm:$0xff]  }
 0x17d   :  { %2969 = vmatpush2.bf16.msra.mxu1 %v4050_v62  ;;  %2981 = vmatprep.subr.bf16.mxu0 %v4055_v0  ;;  %v4106_v62 = vld [vmem:[#allocation8 + $0x3ec] ss:$16 sps:$4 sm:$0xff]   ;;  %v4101_v0 = vld [vmem:[#allocation8 + $0x1e8] ss:$16 sps:$4 sm:$0xff]  }
 0x17e   :  { %3024 = vmatprep.subr.bf16.mxu1 %v4058_v1  ;;  %v4104_v1 = vld [vmem:[#allocation8 + $0x3e8] ss:$16 sps:$4 sm:$0xff]  }
 0x17f   :  { %v1019_v9 = vpop.f32.mrf.mxu0  ;;  %2928 = vmatmul.mubr.bf16.vlgmr.msra.gmra.mxu0 %v4411_v12 }
 0x180   :  { %v1062_v10 = vpop.f32.mrf.mxu1  ;;  %2971 = vmatmul.mubr.bf16.vlgmr.msra.gmra.mxu1 %v4413_v13  ;;  %v1020_v21 = vadd.f32 %v1019_v9, %v250_v3  ;;  %2982 = vmatpush1.bf16.msra.mxu0 %v4053_v4  ;;  %v4112_v4 = vld [vmem:[#allocation8 + $0x3cc] ss:$16 sps:$4 sm:$0xff]   ;;  %v4113_v9 = vld [vmem:[#allocation8 + $0x1a8] ss:$16 sps:$4 sm:$0xff]  }
 0x181   :  { %3025 = vmatpush1.bf16.msra.mxu1 %v4056_v5  ;;  %v1021_v15 = vpop.f32.mrf.mxu0  ;;  %2983 = vmatprep.subr.bf16.mxu0 %v4061_v6  ;;  %v4107_v5 = vld [vmem:[#allocation8 + $0x1c8] ss:$16 sps:$4 sm:$0xff]  }
 0x182   :  { %v1064_v16 = vpop.f32.mrf.mxu1  ;;  %3026 = vmatprep.subr.bf16.mxu1 %v4064_v7  ;;  %v1063_v19 = vadd.f32 %v1062_v10, %v1020_v21  ;;  %v1022_v20 = vadd.f32 %v1021_v15, %v254_v8  ;;  %3013 = vmatprep.mubr.bf16.mxu0 %v4405_v53  ;;  %v4110_v6 = vld [vmem:[#allocation8 + $0x3c8] ss:$16 sps:$4 sm:$0xff]   ;;  %v4115_v7 = vld [vmem:[#allocation8 + $0x1ac] ss:$16 sps:$4 sm:$0xff]  }
 0x183   :  { %3056 = vmatprep.mubr.bf16.mxu1 %v4407_v54  ;;  %v1023_v26 = vpop.f32.mrf.mxu0  ;;  %v4116_v10 = vld [vmem:[#allocation8 + $0x3a8] ss:$16 sps:$4 sm:$0xff]   ;;  %v4121_v21 = vld [vmem:[#allocation8 + $0x18c] ss:$16 sps:$4 sm:$0xff]  }
 0x184   :  { %v1066_v22 = vpop.f32.mrf.mxu1  ;;  %v1073_v23 = vmax.f32 %v1063_v19, 0.0  ;;  %v1065_v24 = vadd.f32 %v1064_v16, %v1022_v20  ;;  %v1024_v25 = vadd.f32 %v1023_v26, %v250_v3  ;;  %2984 = vmatpush1.bf16.msra.mxu0 %v4059_v11  ;;  %v4109_v3 = vld [vmem:[#allocation8 + $0x1cc] ss:$16 sps:$4 sm:$0xff]   ;;  %v4122_v15 = vld [vmem:[#allocation8 + $0x388] ss:$16 sps:$4 sm:$0xff]  }
 0x185   :  { %3027 = vmatpush1.bf16.msra.mxu1 %v4062_v14  ;;  %v1025_v31 = vpop.f32.mrf.mxu0  ;;  %2985 = vmatprep.subr.bf16.mxu0 %v4067_v17  ;;  %v4124_v11 = vld [vmem:[#allocation8 + $0x38c] ss:$16 sps:$4 sm:$0xff]   ;;  %v4119_v14 = vld [vmem:[#allocation8 + $0x188] ss:$16 sps:$4 sm:$0xff]  }
 0x186   :  { %3028 = vmatprep.subr.bf16.mxu1 %v4070_v18  ;;  %v1074_v34 = vmax.f32 %v1065_v24, 0.0  ;;  %v1067_v35 = vadd.f32 %v1066_v22, %v1024_v25  ;;  %v1026_v36 = vadd.f32 %v1025_v31, %v254_v8  ;;  %v1068_v53 = vpop.f32.mrf.mxu1  ;;  %v4118_v8 = vld [vmem:[#allocation8 + $0x3ac] ss:$16 sps:$4 sm:$0xff]   ;;  %v4125_v18 = vld [vmem:[#allocation8 + $0x168] ss:$16 sps:$4 sm:$0xff]  }
 0x187   :  { %v4127_v16 = vld [vmem:[#allocation8 + $0x16c] ss:$16 sps:$4 sm:$0xff]   ;;  %v4128_v19 = vld [vmem:[#allocation8 + $0x368] ss:$16 sps:$4 sm:$0xff]  }
 0x188   :  { %v3550_v37 = vpack.c.bf16 %v1074_v34, %v1073_v23  ;;  %v1069_v54 = vadd.f32 %v1068_v53, %v1026_v36  ;;  %2986 = vmatpush1.bf16.msra.mxu0 %v4065_v28  ;;  %v1077_v42 = vmax.f32 %v1067_v35, 0.0  ;;  %v4130_v17 = vld [vmem:[#allocation8 + $0x36c] ss:$16 sps:$4 sm:$0xff]   ;;  %v4131_v22 = vld [vmem:[#allocation8 + $0x148] ss:$16 sps:$4 sm:$0xff]  }
 0x189   :  { %3029 = vmatpush1.bf16.msra.mxu1 %v4068_v29  ;;  %2987 = vmatprep.subr.bf16.mxu0 %v4073_v32  ;;  %v4133_v20 = vld [vmem:[#allocation8 + $0x14c] ss:$16 sps:$4 sm:$0xff]   ;;  %v4134_v23 = vld [vmem:[#allocation8 + $0x348] ss:$16 sps:$4 sm:$0xff]   ;;  %v1235_v35 = vld [vmem:[%s4498_s5] sm:$0xf] }
 0x18a   :  { %3030 = vmatprep.subr.bf16.mxu1 %v4076_v33  ;;  %1104 = vst [vmem:[#allocation11 + $0x8] sm:$0xff] %v3550_v37  ;;  %v1078_v43 = vmax.f32 %v1069_v54, 0.0  ;;  %v4136_v26 = vld [vmem:[#allocation8 + $0x34c] ss:$16 sps:$4 sm:$0xff]   ;;  %v4137_v28 = vld [vmem:[#allocation8 + $0x128] ss:$16 sps:$4 sm:$0xff]   ;;  %v1240_v36 = vrot.slane %v1235_v35, %v4435_v27  ;;  %v1244_v53 = vrot.slane %v1235_v35, %v4438_v30 }
 0x18b   :  { %v4139_v24 = vld [vmem:[#allocation8 + $0x12c] ss:$16 sps:$4 sm:$0xff]   ;;  %v4140_v29 = vld [vmem:[#allocation8 + $0x328] ss:$16 sps:$4 sm:$0xff]   ;;  %s4328_s5 = smov [#allocation12]  }
 0x18c   :  { %v3552_v44 = vpack.c.bf16 %v1078_v43, %v1077_v42  ;;  %2988 = vmatpush1.bf16.msra.mxu0 %v4071_v38  ;;  %v4142_v25 = vld [vmem:[#allocation8 + $0x32c] ss:$16 sps:$4 sm:$0xff]   ;;  %v4143_v33 = vld [vmem:[#allocation8 + $0x108] ss:$16 sps:$4 sm:$0xff]   ;;  %s3120_s17 = sshll.u32 %s4328_s5, 4  ;;  %s3121_s17 = int_to_ptr.vmem [resolvable:$true] %s3120_s17 }
 0x18d   :  { %3031 = vmatpush1.bf16.msra.mxu1 %v4074_v39  ;;  %2989 = vmatprep.subr.bf16.mxu0 %v4079_v40  ;;  %v4145_v31 = vld [vmem:[#allocation8 + $0x10c] ss:$16 sps:$4 sm:$0xff]   ;;  %v4146_v34 = vld [vmem:[#allocation8 + $0x308] ss:$16 sps:$4 sm:$0xff]   ;;  %s4249_s20 = scalar_lea.vmem %s3121_s17, 512  ;;  %p4254_p12 = scmp.lt.s32.totalorder %s3121_s17, %s3121_s17 }
 0x18e   :  { %3032 = vmatprep.subr.bf16.mxu1 %v4082_v41  ;;  %1106 = vst [vmem:[#allocation11 + $0x18] sm:$0xff] %v3552_v44  ;;  %v4148_v32 = vld [vmem:[#allocation8 + $0x30c] ss:$16 sps:$4 sm:$0xff]   ;;  %p4250_p11 = scmp.ne.s32.totalorder %s3121_s17, %s4249_s20  ;;  %p4255_p13 = scmp.lt.s32.totalorder %s4249_s20, %s4249_s20 }
 0x190   :  { %2990 = vmatpush1.bf16.msra.mxu0 %v4077_v45  ;;  %p4256_p0 = por %p4255_p13, %p4254_p12 }
 0x191   :  { %3033 = vmatpush1.bf16.msra.mxu1 %v4080_v46  ;;  %2991 = vmatprep.subr.bf16.mxu0 %v4085_v47 }
 0x192   :  { %3034 = vmatprep.subr.bf16.mxu1 %v4088_v48  ;;  %p4257_p1 = pnand %p4256_p0, %p4250_p11 }
 0x194   :  { %2992 = vmatpush1.bf16.msra.mxu0 %v4083_v49 }
 0x195   :  { %3035 = vmatpush1.bf16.msra.mxu1 %v4086_v50  ;;  %2993 = vmatprep.subr.bf16.mxu0 %v4091_v51 }
 0x196   :  { %3036 = vmatprep.subr.bf16.mxu1 %v4094_v52 }
 0x198   :  { %2994 = vmatpush1.bf16.msra.mxu0 %v4089_v55 }
 0x199   :  { %3037 = vmatpush1.bf16.msra.mxu1 %v4092_v56  ;;  %2995 = vmatprep.subr.bf16.mxu0 %v4097_v57 }
 0x19a   :  { %3038 = vmatprep.subr.bf16.mxu1 %v4100_v58  ;;  %v1248_v58 = vrot.slane %v1235_v35, %v4449_v63 }
 0x19c   :  { %2996 = vmatpush1.bf16.msra.mxu0 %v4095_v59  ;;  %v1252_v59 = vrot.slane %v1235_v35, %v4452_v2 }
 0x19d   :  { %3039 = vmatpush1.bf16.msra.mxu1 %v4098_v60  ;;  %2997 = vmatprep.subr.bf16.mxu0 %v4103_v61 }
 0x19e   :  { %3040 = vmatprep.subr.bf16.mxu1 %v4106_v62 }
 0x1a0   :  { %2998 = vmatpush2.bf16.msra.mxu0 %v4101_v0 }
 0x1a1   :  { %3041 = vmatpush2.bf16.msra.mxu1 %v4104_v1  ;;  %2999 = vmatprep.subr.bf16.mxu0 %v4109_v3 }
 0x1a2   :  { %3042 = vmatprep.subr.bf16.mxu1 %v4112_v4 }
 0x1a4   :  { %3000 = vmatpush2.bf16.msra.mxu0 %v4107_v5 }
 0x1a5   :  { %3043 = vmatpush2.bf16.msra.mxu1 %v4110_v6  ;;  %3001 = vmatprep.subr.bf16.mxu0 %v4115_v7 }
 0x1a6   :  { %3044 = vmatprep.subr.bf16.mxu1 %v4118_v8 }
 0x1a8   :  { %3002 = vmatpush2.bf16.msra.mxu0 %v4113_v9 }
 0x1a9   :  { %3045 = vmatpush2.bf16.msra.mxu1 %v4116_v10  ;;  %3003 = vmatprep.subr.bf16.mxu0 %v4121_v21 }
 0x1aa   :  { %3046 = vmatprep.subr.bf16.mxu1 %v4124_v11 }
 0x1ac   :  { %3004 = vmatpush2.bf16.msra.mxu0 %v4119_v14 }
 0x1ad   :  { %3047 = vmatpush2.bf16.msra.mxu1 %v4122_v15  ;;  %3005 = vmatprep.subr.bf16.mxu0 %v4127_v16 }
 0x1ae   :  { %3048 = vmatprep.subr.bf16.mxu1 %v4130_v17 }
 0x1b0   :  { %3006 = vmatpush2.bf16.msra.mxu0 %v4125_v18 }
 0x1b1   :  { %3049 = vmatpush2.bf16.msra.mxu1 %v4128_v19  ;;  %3007 = vmatprep.subr.bf16.mxu0 %v4133_v20 }
 0x1b2   :  { %3050 = vmatprep.subr.bf16.mxu1 %v4136_v26 }
 0x1b4   :  { %3008 = vmatpush2.bf16.msra.mxu0 %v4131_v22 }
 0x1b5   :  { %3051 = vmatpush2.bf16.msra.mxu1 %v4134_v23  ;;  %3009 = vmatprep.subr.bf16.mxu0 %v4139_v24 }
 0x1b6   :  { %3052 = vmatprep.subr.bf16.mxu1 %v4142_v25 }
 0x1b8   :  { %3010 = vmatpush2.bf16.msra.mxu0 %v4137_v28 }
 0x1b9   :  { %3053 = vmatpush2.bf16.msra.mxu1 %v4140_v29  ;;  %3011 = vmatprep.subr.bf16.mxu0 %v4145_v31 }
 0x1ba   :  { %3054 = vmatprep.subr.bf16.mxu1 %v4148_v32 }
 0x1bc   :  { %3012 = vmatpush2.bf16.msra.mxu0 %v4143_v33 }
 0x1bd   :  { %3055 = vmatpush2.bf16.msra.mxu1 %v4146_v34 }
 0x1bf   :  { %v1931_v37 = vpop.f32.mrf.mxu0  ;;  %3014 = vmatmul.mubr.bf16.vlgmr.msra.gmra.mxu0 %v4411_v12 }
 0x1c0   :  { %v1974_v54 = vpop.f32.mrf.mxu1  ;;  %3057 = vmatmul.mubr.bf16.vlgmr.msra.gmra.mxu1 %v4413_v13  ;;  %v1932_v38 = vadd.f32 %v1931_v37, %v1240_v36 }
 0x1c1   :  { %v1933_v39 = vpop.f32.mrf.mxu0 }
 0x1c2   :  { %v1976_v40 = vpop.f32.mrf.mxu1  ;;  %v1975_v41 = vadd.f32 %v1974_v54, %v1932_v38  ;;  %v1934_v42 = vadd.f32 %v1933_v39, %v1244_v53 }
 0x1c3   :  { %v1935_v43 = vpop.f32.mrf.mxu0 }
 0x1c4   :  { %v1978_v44 = vpop.f32.mrf.mxu1  ;;  %v2069_v45 = vmax.f32 %v1975_v41, 0.0  ;;  %v1977_v46 = vadd.f32 %v1976_v40, %v1934_v42  ;;  %v1936_v47 = vadd.f32 %v1935_v43, %v1240_v36 }
 0x1c5   :  { %v1937_v48 = vpop.f32.mrf.mxu0 }
 0x1c6   :  { %v2070_v49 = vmax.f32 %v1977_v46, 0.0  ;;  %v1979_v50 = vadd.f32 %v1978_v44, %v1936_v47  ;;  %v1938_v51 = vadd.f32 %v1937_v48, %v1244_v53  ;;  %v1980_v52 = vpop.f32.mrf.mxu1 }
 0x1c8   :  { %v3553_v55 = vpack.c.bf16 %v2070_v49, %v2069_v45  ;;  %v1981_v56 = vadd.f32 %v1980_v52, %v1938_v51  ;;  %v2073_v12 = vmax.f32 %v1979_v50, 0.0 }
 0x1ca   :  { %2101 = vst [vmem:[#allocation12] sm:$0xff] %v3553_v55  ;;  %v2074_v13 = vmax.f32 %v1981_v56, 0.0 }
 0x1cc   :  { %v3555_v57 = vpack.c.bf16 %v2074_v13, %v2073_v12 }
 0x1ce   :  { %2103 = vst [vmem:[#allocation12 + $0x10] sm:$0xff] %v3555_v57 }
 0x1ff   :  { %v2017_v60 = vpop.f32.mrf.mxu0 }
 0x200   :  { %v2060_v61 = vpop.f32.mrf.mxu1  ;;  %v2018_v62 = vadd.f32 %v2017_v60, %v1248_v58 }
 0x201   :  { %v2019_v0 = vpop.f32.mrf.mxu0 }
 0x202   :  { %v2062_v1 = vpop.f32.mrf.mxu1  ;;  %v2061_v3 = vadd.f32 %v2060_v61, %v2018_v62  ;;  %v2020_v4 = vadd.f32 %v2019_v0, %v1252_v59 }
 0x203   :  { %v2021_v5 = vpop.f32.mrf.mxu0 }
 0x204   :  { %v2064_v6 = vpop.f32.mrf.mxu1  ;;  %v2071_v7 = vmax.f32 %v2061_v3, 0.0  ;;  %v2063_v8 = vadd.f32 %v2062_v1, %v2020_v4  ;;  %v2022_v9 = vadd.f32 %v2021_v5, %v1248_v58 }
 0x205   :  { %v2023_v10 = vpop.f32.mrf.mxu0 }
 0x206   :  { %v2072_v21 = vmax.f32 %v2063_v8, 0.0  ;;  %v2065_v11 = vadd.f32 %v2064_v6, %v2022_v9  ;;  %v2024_v14 = vadd.f32 %v2023_v10, %v1252_v59  ;;  %v2066_v15 = vpop.f32.mrf.mxu1 }
 0x208   :  { %v3554_v16 = vpack.c.bf16 %v2072_v21, %v2071_v7  ;;  %v2067_v17 = vadd.f32 %v2066_v15, %v2024_v14  ;;  %v2075_v18 = vmax.f32 %v2065_v11, 0.0 }
 0x20a   :  { %2102 = vst [vmem:[#allocation12 + $0x8] sm:$0xff] %v3554_v16  ;;  %v2076_v19 = vmax.f32 %v2067_v17, 0.0 }
 0x20c   :  { %v3556_v20 = vpack.c.bf16 %v2076_v19, %v2075_v18 }
 0x20e   :  { %2104 = vst [vmem:[#allocation12 + $0x18] sm:$0xff] %v3556_v20 }
 0x20f   :  { %4260 = shalt.err (!%p4257_p1)
}
 0x210   :  { %3126 = dma.vmem_to_hbm [thread:$0]  %s3121_s17, 512, %s4501_s8, [#allocation13], %s4320_s12, %s4320_s12, %s4321_s13  }
 0x211   :  { %s4269_s1 = scalar_lea.vmem %s3109_s19, 512  ;;  %p4274_p3 = scmp.lt.s32.totalorder %s3109_s19, %s3109_s19 }
 0x212   :  { %p4270_p2 = scmp.ne.s32.totalorder %s3109_s19, %s4269_s1  ;;  %p4275_p4 = scmp.lt.s32.totalorder %s4269_s1, %s4269_s1 }
 0x214   :  { %p4276_p5 = por %p4275_p4, %p4274_p3 }
 0x216   :  { %p4277_p6 = pnand %p4276_p5, %p4270_p2 }
 0x218   :  { %4280 = shalt.err (!%p4277_p6)
}
 0x219   :  { %3114 = dma.vmem_to_hbm [thread:$0]  %s3109_s19, 512, %s4500_s7, [#allocation4], %s4320_s12, %s4320_s12, %s4321_s13   ;;  %v2233_v26 = vld [vmem:[#allocation10] sm:$0xf] }
 0x21a   :  { %v2238_v22 = vrot.slane %v2233_v26, %v4435_v27  ;;  %v2242_v23 = vrot.slane %v2233_v26, %v4438_v30  ;;  %v2246_v45 = vrot.slane %v2233_v26, %v4449_v63  ;;  %v2250_v46 = vrot.slane %v2233_v26, %v4452_v2  ;;  %s4330_s7 = smov [#allocation14]  }
 0x21b   :  { %s3132_s8 = sshll.u32 %s4330_s7, 4  ;;  %s3133_s8 = int_to_ptr.vmem [resolvable:$true] %s3132_s8 }
 0x21c   :  { %s4289_s25 = scalar_lea.vmem %s3133_s8, 512  ;;  %p4294_p8 = scmp.lt.s32.totalorder %s3133_s8, %s3133_s8 }
 0x21d   :  { %p4290_p7 = scmp.ne.s32.totalorder %s3133_s8, %s4289_s25  ;;  %p4295_p9 = scmp.lt.s32.totalorder %s4289_s25, %s4289_s25 }
 0x21f   :  { %p4296_p10 = por %p4295_p9, %p4294_p8 }
 0x221   :  { %p4297_p11 = pnand %p4296_p10, %p4290_p7 }
 0x23f   :  { %v2929_v24 = vpop.f32.mrf.mxu0 }
 0x240   :  { %v2972_v25 = vpop.f32.mrf.mxu1  ;;  %v2930_v28 = vadd.f32 %v2929_v24, %v2238_v22 }
 0x241   :  { %v2931_v29 = vpop.f32.mrf.mxu0 }
 0x242   :  { %v2974_v31 = vpop.f32.mrf.mxu1  ;;  %v2973_v32 = vadd.f32 %v2972_v25, %v2930_v28  ;;  %v2932_v33 = vadd.f32 %v2931_v29, %v2242_v23 }
 0x243   :  { %v2933_v34 = vpop.f32.mrf.mxu0 }
 0x244   :  { %v2976_v35 = vpop.f32.mrf.mxu1  ;;  %v3067_v36 = vmax.f32 %v2973_v32, 0.0  ;;  %v2975_v53 = vadd.f32 %v2974_v31, %v2932_v33  ;;  %v2934_v37 = vadd.f32 %v2933_v34, %v2238_v22 }
 0x245   :  { %v2935_v54 = vpop.f32.mrf.mxu0 }
 0x246   :  { %v3068_v38 = vmax.f32 %v2975_v53, 0.0  ;;  %v2977_v39 = vadd.f32 %v2976_v35, %v2934_v37  ;;  %v2936_v40 = vadd.f32 %v2935_v54, %v2242_v23  ;;  %v2978_v41 = vpop.f32.mrf.mxu1 }
 0x248   :  { %v3557_v27 = vpack.c.bf16 %v3068_v38, %v3067_v36  ;;  %v2979_v42 = vadd.f32 %v2978_v41, %v2936_v40  ;;  %v3071_v30 = vmax.f32 %v2977_v39, 0.0 }
 0x24a   :  { %3099 = vst [vmem:[#allocation14] sm:$0xff] %v3557_v27  ;;  %v3072_v43 = vmax.f32 %v2979_v42, 0.0 }
 0x24c   :  { %v3559_v44 = vpack.c.bf16 %v3072_v43, %v3071_v30 }
 0x24e   :  { %3101 = vst [vmem:[#allocation14 + $0x10] sm:$0xff] %v3559_v44 }
 0x27f   :  { %v3015_v47 = vpop.f32.mrf.mxu0 }
 0x280   :  { %v3058_v48 = vpop.f32.mrf.mxu1  ;;  %v3016_v49 = vadd.f32 %v3015_v47, %v2246_v45 }
 0x281   :  { %v3017_v50 = vpop.f32.mrf.mxu0 }
 0x282   :  { %v3060_v51 = vpop.f32.mrf.mxu1  ;;  %v3059_v52 = vadd.f32 %v3058_v48, %v3016_v49  ;;  %v3018_v55 = vadd.f32 %v3017_v50, %v2250_v46 }
 0x283   :  { %v3019_v56 = vpop.f32.mrf.mxu0 }
 0x284   :  { %v3062_v12 = vpop.f32.mrf.mxu1  ;;  %v3061_v13 = vadd.f32 %v3060_v51, %v3018_v55  ;;  %v3020_v57 = vadd.f32 %v3019_v56, %v2246_v45  ;;  %v3069_v59 = vmax.f32 %v3059_v52, 0.0 }
 0x285   :  { %v3021_v58 = vpop.f32.mrf.mxu0 }
 0x286   :  { %v3070_v60 = vmax.f32 %v3061_v13, 0.0  ;;  %v3063_v61 = vadd.f32 %v3062_v12, %v3020_v57  ;;  %v3022_v62 = vadd.f32 %v3021_v58, %v2250_v46  ;;  %v3064_v0 = vpop.f32.mrf.mxu1 }
 0x288   :  { %v3558_v63 = vpack.c.bf16 %v3070_v60, %v3069_v59  ;;  %v3065_v1 = vadd.f32 %v3064_v0, %v3022_v62  ;;  %v3073_v2 = vmax.f32 %v3063_v61, 0.0 }
 0x28a   :  { %3100 = vst [vmem:[#allocation14 + $0x8] sm:$0xff] %v3558_v63  ;;  %v3074_v3 = vmax.f32 %v3065_v1, 0.0 }
 0x28c   :  { %v3560_v4 = vpack.c.bf16 %v3074_v3, %v3073_v2 }
 0x28e   :  { %3102 = vst [vmem:[#allocation14 + $0x18] sm:$0xff] %v3560_v4 }
 0x28f   :  { %4300 = shalt.err (!%p4297_p11)
}
 0x290   :  { %3138 = dma.vmem_to_hbm [thread:$0]  %s3133_s8, 512, %s4502_s9, [#allocation13], %s4320_s12, %s4320_s12, %s4321_s13  }
 0x291   :  { %4315 = dma.done.wait [#allocation4], 512  }
 0x292   :  { %4316 = vsyncadd [#allocation4], 4294966784 }
 0x293   :  { %4317 = dma.done.wait [#allocation13], 1024  }
 0x294   :  { %4318 = vsyncadd [#allocation13], 4294966272 }
 0x295   :  { %3148 = vsyncpa [#allocation3], 1 }
 0x296   :  { %3149 = vsyncpa [#allocation6], 1 }
 0x297   :  { %3150 = vsyncpa [#allocation9], 1 }
 0x298   :  { %3151 = vsyncpa [#allocation4], 1 }
 0x299   :  { %3152 = vsyncpa [#allocation13], 1 }

</bundles_post_ra>
